<compile_context>
chip_gen: v7x
topology: tpu7x:2x2x1
jax: 0.10.0
libtpu: 0.0.40
codegen_flags: <defaults>
</compile_context>

<pallas_src>
import numpy as np
import jax
import jax.numpy as jnp
from jax.experimental import pallas as pl
from jax.experimental.pallas import tpu as pltpu


TILE_M_MAX = 1024          # max activation rows per grid step (conv matmuls)
TILE_B_MAX = 256           # max batch rows per grid step (fused head)
HEAD_NPAD = 128            # lane-dense padded width of the fused head output
VMEM_LIMIT = 32 * 1024 * 1024   # safe on v5e/v6e/v7x (scoped default on v7x)


def _round_up(x, m):
    return ((x + m - 1) // m) * m


def _pick_tile(m, cap):
    """Largest tile <= cap; force >=2 grid steps for big m (v7x megacore)."""
    if m <= cap // 2:
        return m                           # single step, block == full dim
    return min(cap, _round_up(pl.cdiv(m, 2), 8))


# ---------------------------------------------------------------------------
# Pallas kernels
# ---------------------------------------------------------------------------
def _matmul_bias_relu_kernel(x_ref, w_ref, b_ref, o_ref):
    """o = relu(x @ w + b); bf16 MXU inputs, f32 accumulate."""
    y = jnp.dot(x_ref[...], w_ref[...], preferred_element_type=jnp.float32)
    y = jnp.maximum(y + b_ref[...], 0.0)
    o_ref[...] = y.astype(o_ref.dtype)


def _head_logits_kernel(x_ref, w1_ref, b1_ref, w2_ref, b2_ref, y_ref):
    """Both dueling heads fused: y = relu(x@W1 + b1) @ W2 + b2.

    x:(tb,feat) bf16, w1:(feat,1024) bf16 (= [adv1 | val1]), b1:(1,1024) f32,
    w2:(1024,128) bf16 (cols [0,n_actions)=adv2, col n_actions=val2, rest 0),
    b2:(1,128) f32.  Output (tb,128) f32, lane-dense.
    """
    h = jnp.dot(x_ref[...], w1_ref[...], preferred_element_type=jnp.float32)
    h = jnp.maximum(h + b1_ref[...], 0.0)
    y = jnp.dot(h.astype(jnp.bfloat16), w2_ref[...],
                preferred_element_type=jnp.float32)
    y_ref[...] = y + b2_ref[...]


# ---------------------------------------------------------------------------
# Pallas wrappers
# ---------------------------------------------------------------------------
def pallas_matmul_bias_relu(x, w, b, *, out_dtype):
    """x:(M,K) bf16, w:(K,N) bf16, b:(1,N) f32 -> relu(x@w+b):(M,N), M-tiled."""
    M, K = x.shape
    N = w.shape[1]
    tile_m = _pick_tile(M, TILE_M_MAX)
    grid = (pl.cdiv(M, tile_m),)
    bytes_accessed = (M * K * x.dtype.itemsize + K * N * w.dtype.itemsize
                      + N * 4 + M * N * jnp.dtype(out_dtype).itemsize)
    return pl.pallas_call(
        _matmul_bias_relu_kernel,
        out_shape=jax.ShapeDtypeStruct((M, N), out_dtype),
        grid=grid,
        in_specs=[
            pl.BlockSpec((tile_m, K), lambda i: (i, 0)),   # activation rows
            pl.BlockSpec((K, N), lambda i: (0, 0)),        # weight resident
            pl.BlockSpec((1, N), lambda i: (0, 0)),        # bias resident
        ],
        out_specs=pl.BlockSpec((tile_m, N), lambda i: (i, 0)),
        compiler_params=pltpu.CompilerParams(
            dimension_semantics=("parallel",),
            # Let XLA fuse the im2col slice/stack producer into the input DMA.
            allow_input_fusion=[True, False, False],
            vmem_limit_bytes=VMEM_LIMIT),
        cost_estimate=pl.CostEstimate(
            flops=2 * M * N * K, transcendentals=0,
            bytes_accessed=bytes_accessed),
    )(x, w, b)


def pallas_head_logits(x_flat, w1, b1, w2, b2):
    """x_flat:(B,feat) bf16 -> raw fused-head logits (B, HEAD_NPAD) f32."""
    B, feat = x_flat.shape
    H1 = w1.shape[1]
    NP = w2.shape[1]
    tile_b = _pick_tile(B, TILE_B_MAX)
    grid = (pl.cdiv(B, tile_b),)
    bytes_accessed = (B * feat * 2 + feat * H1 * 2 + H1 * 4
                      + H1 * NP * 2 + NP * 4 + B * NP * 4)
    return pl.pallas_call(
        _head_logits_kernel,
        out_shape=jax.ShapeDtypeStruct((B, NP), jnp.float32),
        grid=grid,
        in_specs=[
            pl.BlockSpec((tile_b, feat), lambda i: (i, 0)),  # batch tile
            pl.BlockSpec((feat, H1), lambda i: (0, 0)),      # W1 resident
            pl.BlockSpec((1, H1), lambda i: (0, 0)),         # b1 resident
            pl.BlockSpec((H1, NP), lambda i: (0, 0)),        # W2 resident
            pl.BlockSpec((1, NP), lambda i: (0, 0)),         # b2 resident
        ],
        out_specs=pl.BlockSpec((tile_b, NP), lambda i: (i, 0)),
        compiler_params=pltpu.CompilerParams(
            dimension_semantics=("parallel",),
            vmem_limit_bytes=VMEM_LIMIT),
        cost_estimate=pl.CostEstimate(
            flops=2 * B * feat * H1 + 2 * B * H1 * NP, transcendentals=0,
            bytes_accessed=bytes_accessed),
    )(x_flat, w1, b1, w2, b2)


# ---------------------------------------------------------------------------
# Conv-as-matmul glue (NHWC im2col in plain JAX, matmul in Pallas)
# ---------------------------------------------------------------------------
def conv2d_size_out(size, kernel_size, stride):
    return (size - (kernel_size - 1) - 1) // stride + 1


def im2col_nhwc(x, kh, kw, stride):
    """x:(B,H,W,C) -> patches (B*OH*OW, kh*kw*C), column order (kh, kw, C)."""
    B, H, W, C = x.shape
    OH = conv2d_size_out(H, kh, stride)
    OW = conv2d_size_out(W, kw, stride)
    slabs = []
    for i in range(kh):
        for j in range(kw):
            slabs.append(x[:, i:i + stride * OH:stride,
                           j:j + stride * OW:stride, :])
    p = jnp.stack(slabs, axis=3)                      # (B, OH, OW, kh*kw, C)
    return p.reshape(B * OH * OW, kh * kw * C), OH, OW


def conv2d_relu_nhwc(x, w_mat, b, kh, kw, stride):
    """x:(B,H,W,C) bf16, w_mat:(kh*kw*C, C_out) bf16, b:(1,C_out) f32."""
    B = x.shape[0]
    patches, OH, OW = im2col_nhwc(x, kh, kw, stride)
    c_out = w_mat.shape[1]
    y = pallas_matmul_bias_relu(patches, w_mat, b, out_dtype=jnp.bfloat16)
    return y.reshape(B, OH, OW, c_out)


# ---------------------------------------------------------------------------
# Parameters (PyTorch layout) + conversion to fused kernel layout
# ---------------------------------------------------------------------------
def init_params(key, c, h, w, n_actions):
    convw = conv2d_size_out(conv2d_size_out(conv2d_size_out(w, 8, 4), 4, 2), 3, 1)
    convh = conv2d_size_out(conv2d_size_out(conv2d_size_out(h, 8, 4), 4, 2), 3, 1)
    feat = convw * convh * 64

    ks = jax.random.split(key, 14)

    def dense(kw_, kb_, shape_w):
        fan_in = shape_w[0] if len(shape_w) == 2 else shape_w[1] * shape_w[2] * shape_w[3]
        scale = 1.0 / jnp.sqrt(jnp.float32(fan_in))
        w_ = jax.random.uniform(kw_, shape_w, jnp.float32, -scale, scale)
        b_shape = (shape_w[1],) if len(shape_w) == 2 else (shape_w[0],)
        b_ = jax.random.uniform(kb_, b_shape, jnp.float32, -scale, scale)
        return w_, b_

    params = {}
    params["conv1_w"], params["conv1_b"] = dense(ks[0], ks[1], (32, c, 8, 8))
    params["conv2_w"], params["conv2_b"] = dense(ks[2], ks[3], (64, 32, 4, 4))
    params["conv3_w"], params["conv3_b"] = dense(ks[4], ks[5], (64, 64, 3, 3))
    params["adv1_w"], params["adv1_b"] = dense(ks[6], ks[7], (feat, 512))
    params["adv2_w"], params["adv2_b"] = dense(ks[8], ks[9], (512, n_actions))
    params["val1_w"], params["val1_b"] = dense(ks[10], ks[11], (feat, 512))
    params["val2_w"], params["val2_b"] = dense(ks[12], ks[13], (512, 1))
    return params


def prepare_params(p, conv_h, conv_w, n_actions):
    """Convert PyTorch-layout params into the fused / NHWC kernel layout."""
    def conv_mat(w):
        co, ci, kh, kw = w.shape
        # (C_out, C_in, kh, kw) -> (kh, kw, C_in, C_out) -> (kh*kw*C_in, C_out)
        return w.transpose(2, 3, 1, 0).reshape(kh * kw * ci, co).astype(jnp.bfloat16)

    kp = {
        "c1_w": conv_mat(p["conv1_w"]), "c1_b": p["conv1_b"].reshape(1, -1),
        "c2_w": conv_mat(p["conv2_w"]), "c2_b": p["conv2_b"].reshape(1, -1),
        "c3_w": conv_mat(p["conv3_w"]), "c3_b": p["conv3_b"].reshape(1, -1),
    }

    feat = conv_h * conv_w * 64
    # Row permutation so the NHWC flatten matches PyTorch's NCHW view(B, -1):
    # NHWC-flat position (h, w, c) must pick the NCHW-flat weight row c*H*W + h*W + w.
    perm = np.arange(feat).reshape(64, conv_h, conv_w).transpose(1, 2, 0).reshape(-1)

    # Fused first head layer: [advantage1 | value1] -> (feat, 1024).
    w1 = jnp.concatenate([p["adv1_w"][perm], p["val1_w"][perm]], axis=1)
    b1 = jnp.concatenate([p["adv1_b"], p["val1_b"]]).reshape(1, -1)

    # Fused second layer, lane-dense padded to 128 output columns:
    # cols [0, n_actions) = advantage2, col n_actions = value2, rest zero.
    assert n_actions + 1 <= HEAD_NPAD
    w2 = jnp.zeros((1024, HEAD_NPAD), jnp.float32)
    w2 = w2.at[:512, :n_actions].set(p["adv2_w"])
    w2 = w2.at[512:, n_actions].set(p["val2_w"][:, 0])
    b2 = jnp.zeros((HEAD_NPAD,), jnp.float32)
    b2 = b2.at[:n_actions].set(p["adv2_b"]).at[n_actions].set(p["val2_b"][0])

    kp["h_w1"] = w1.astype(jnp.bfloat16)
    kp["h_b1"] = b1
    kp["h_w2"] = w2.astype(jnp.bfloat16)
    kp["h_b2"] = b2.reshape(1, -1)
    return kp


# ---------------------------------------------------------------------------
# Forward pass
# ---------------------------------------------------------------------------
def dueling_dqn_forward(kparams, x, n_actions):
    """x: (B, C, H, W) NCHW (PyTorch layout) -> (B, n_actions) f32."""
    # Single NCHW->NHWC transpose + bf16 cast (torch's x.float() folded into
    # the bf16 cast); with allow_input_fusion this can fuse into conv1's DMA.
    x = jnp.transpose(x, (0, 2, 3, 1)).astype(jnp.bfloat16)
    x = conv2d_relu_nhwc(x, kparams["c1_w"], kparams["c1_b"], 8, 8, 4)
    x = conv2d_relu_nhwc(x, kparams["c2_w"], kparams["c2_b"], 4, 4, 2)
    x = conv2d_relu_nhwc(x, kparams["c3_w"], kparams["c3_b"], 3, 3, 1)
    B = x.shape[0]
    x = x.reshape(B, -1)   # NHWC flatten; head weight rows were permuted to match

    y = pallas_head_logits(x, kparams["h_w1"], kparams["h_b1"],
                           kparams["h_w2"], kparams["h_b2"])
    adv = y[:, :n_actions]
    value = y[:, n_actions:n_actions + 1]
    # Reference: value + advantage - advantage.mean()  (GLOBAL mean over B*A).
    # Done in plain JAX so the mean stays global when the head is batch-tiled.
    return value + adv - jnp.mean(adv)


# ---------------------------------------------------------------------------
if __name__ == "__main__":
    B, C, H, W = 2, 4, 36, 36     # smallest spatial size the conv tower accepts
    n_actions = 6

    key = jax.random.PRNGKey(0)
    k_params, k_x = jax.random.split(key)
    params = init_params(k_params, C, H, W, n_actions)

    convw = conv2d_size_out(conv2d_size_out(conv2d_size_out(W, 8, 4), 4, 2), 3, 1)
    convh = conv2d_size_out(conv2d_size_out(conv2d_size_out(H, 8, 4), 4, 2), 3, 1)
    kparams = prepare_params(params, convh, convw, n_actions)

    x = jax.random.normal(k_x, (B, C, H, W), jnp.float32)

    fwd = jax.jit(dueling_dqn_forward, static_argnums=(2,))
    out = jax.block_until_ready(fwd(kparams, x, n_actions))

    assert out.shape == (B, n_actions), out.shape
    assert out.dtype == jnp.float32

    print("KERNEL_OK")
</pallas_src>

<mosaic_0001>
module attributes {stable_mosaic.version = 11 : i64} {
  func.func @_matmul_bias_relu_kernel(%arg0: i32, %arg1: memref<128x256xbf16, #tpu.memory_space<vmem>>, %arg2: memref<256x32xbf16, #tpu.memory_space<vmem>>, %arg3: memref<1x32xf32, #tpu.memory_space<vmem>>, %arg4: memref<128x32xbf16, #tpu.memory_space<vmem>>) attributes {dimension_semantics = [#tpu.dimension_semantics<parallel>], iteration_bounds = array<i64: 1>, scalar_prefetch = 0 : i64, scratch_operands = 0 : i64, tpu.core_type = #tpu.core_type<tc>, window_params = [{transform_indices = @transform_0, window_bounds = array<i64: 128, 256>}, {pipeline_mode = #tpu.pipeline_mode<synchronous>, transform_indices = @transform_1, window_bounds = array<i64: 256, 32>}, {pipeline_mode = #tpu.pipeline_mode<synchronous>, transform_indices = @transform_2, window_bounds = array<i64: 1, 32>}, {transform_indices = @transform_3, window_bounds = array<i64: 128, 32>}]} {
    %c0 = arith.constant 0 : index
    %c0_0 = arith.constant 0 : index
    %0 = vector.load %arg1[%c0, %c0_0] : memref<128x256xbf16, #tpu.memory_space<vmem>>, vector<128x256xbf16>
    %c0_1 = arith.constant 0 : index
    %c0_2 = arith.constant 0 : index
    %1 = vector.load %arg2[%c0_1, %c0_2] : memref<256x32xbf16, #tpu.memory_space<vmem>>, vector<256x32xbf16>
    %cst = arith.constant dense<0.000000e+00> : vector<128x32xf32>
    %2 = tpu.matmul %0, %1, %cst {dimension_numbers = #tpu.dot_dimension_numbers<[1], [0], [0], [1], [0, 0, 1, 1], [], []>} : vector<128x256xbf16>, vector<256x32xbf16>, vector<128x32xf32> -> vector<128x32xf32>
    %c0_3 = arith.constant 0 : index
    %c0_4 = arith.constant 0 : index
    %3 = vector.load %arg3[%c0_3, %c0_4] : memref<1x32xf32, #tpu.memory_space<vmem>>, vector<1x32xf32>
    %4 = vector.broadcast %3 : vector<1x32xf32> to vector<128x32xf32>
    %5 = arith.addf %2, %4 : vector<128x32xf32>
    %cst_5 = arith.constant 0.000000e+00 : f32
    %6 = vector.broadcast %cst_5 : f32 to vector<128x32xf32>
    %7 = arith.maximumf %5, %6 : vector<128x32xf32>
    %8 = arith.truncf %7 : vector<128x32xf32> to vector<128x32xbf16>
    %c0_6 = arith.constant 0 : index
    %c0_7 = arith.constant 0 : index
    %9 = vector.load %arg4[%c0_6, %c0_7] : memref<128x32xbf16, #tpu.memory_space<vmem>>, vector<128x32xbf16>
    tpu.vector_store %arg4[%c0_6, %c0_7], %8 {strides = array<i32>} : memref<128x32xbf16, #tpu.memory_space<vmem>>, vector<128x32xbf16>,
    return
  }
  func.func @transform_0(%arg0: i32) -> (i32, i32) {
    %c0_i32 = arith.constant 0 : i32
    %c0_i32_0 = arith.constant 0 : i32
    return %arg0, %c0_i32 : i32, i32
  }
  func.func @transform_1(%arg0: i32) -> (i32, i32) {
    %c0_i32 = arith.constant 0 : i32
    %c0_i32_0 = arith.constant 0 : i32
    %c0_i32_1 = arith.constant 0 : i32
    return %c0_i32, %c0_i32_0 : i32, i32
  }
  func.func @transform_2(%arg0: i32) -> (i32, i32) {
    %c0_i32 = arith.constant 0 : i32
    %c0_i32_0 = arith.constant 0 : i32
    %c0_i32_1 = arith.constant 0 : i32
    return %c0_i32, %c0_i32_0 : i32, i32
  }
  func.func @transform_3(%arg0: i32) -> (i32, i32) {
    %c0_i32 = arith.constant 0 : i32
    %c0_i32_0 = arith.constant 0 : i32
    return %arg0, %c0_i32 : i32, i32
  }
}

module attributes {stable_mosaic.version = 11 : i64} {
  func.func @_matmul_bias_relu_kernel(%arg0: i32, %arg1: memref<18x512xbf16, #tpu.memory_space<vmem>>, %arg2: memref<512x64xbf16, #tpu.memory_space<vmem>>, %arg3: memref<1x64xf32, #tpu.memory_space<vmem>>, %arg4: memref<18x64xbf16, #tpu.memory_space<vmem>>) attributes {dimension_semantics = [#tpu.dimension_semantics<parallel>], iteration_bounds = array<i64: 1>, scalar_prefetch = 0 : i64, scratch_operands = 0 : i64, tpu.core_type = #tpu.core_type<tc>, window_params = [{transform_indices = @transform_0, window_bounds = array<i64: 18, 512>}, {pipeline_mode = #tpu.pipeline_mode<synchronous>, transform_indices = @transform_1, window_bounds = array<i64: 512, 64>}, {pipeline_mode = #tpu.pipeline_mode<synchronous>, transform_indices = @transform_2, window_bounds = array<i64: 1, 64>}, {transform_indices = @transform_3, window_bounds = array<i64: 18, 64>}]} {
    %c0 = arith.constant 0 : index
    %c0_0 = arith.constant 0 : index
    %0 = vector.load %arg1[%c0, %c0_0] : memref<18x512xbf16, #tpu.memory_space<vmem>>, vector<18x512xbf16>
    %c0_1 = arith.constant 0 : index
    %c0_2 = arith.constant 0 : index
    %1 = vector.load %arg2[%c0_1, %c0_2] : memref<512x64xbf16, #tpu.memory_space<vmem>>, vector<512x64xbf16>
    %cst = arith.constant dense<0.000000e+00> : vector<18x64xf32>
    %2 = tpu.matmul %0, %1, %cst {dimension_numbers = #tpu.dot_dimension_numbers<[1], [0], [0], [1], [0, 0, 1, 1], [], []>} : vector<18x512xbf16>, vector<512x64xbf16>, vector<18x64xf32> -> vector<18x64xf32>
    %c0_3 = arith.constant 0 : index
    %c0_4 = arith.constant 0 : index
    %3 = vector.load %arg3[%c0_3, %c0_4] : memref<1x64xf32, #tpu.memory_space<vmem>>, vector<1x64xf32>
    %4 = vector.broadcast %3 : vector<1x64xf32> to vector<18x64xf32>
    %5 = arith.addf %2, %4 : vector<18x64xf32>
    %cst_5 = arith.constant 0.000000e+00 : f32
    %6 = vector.broadcast %cst_5 : f32 to vector<18x64xf32>
    %7 = arith.maximumf %5, %6 : vector<18x64xf32>
    %8 = arith.truncf %7 : vector<18x64xf32> to vector<18x64xbf16>
    %c0_6 = arith.constant 0 : index
    %c0_7 = arith.constant 0 : index
    %9 = vector.load %arg4[%c0_6, %c0_7] : memref<18x64xbf16, #tpu.memory_space<vmem>>, vector<18x64xbf16>
    tpu.vector_store %arg4[%c0_6, %c0_7], %8 {strides = array<i32>} : memref<18x64xbf16, #tpu.memory_space<vmem>>, vector<18x64xbf16>,
    return
  }
  func.func @transform_0(%arg0: i32) -> (i32, i32) {
    %c0_i32 = arith.constant 0 : i32
    %c0_i32_0 = arith.constant 0 : i32
    return %arg0, %c0_i32 : i32, i32
  }
  func.func @transform_1(%arg0: i32) -> (i32, i32) {
    %c0_i32 = arith.constant 0 : i32
    %c0_i32_0 = arith.constant 0 : i32
    %c0_i32_1 = arith.constant 0 : i32
    return %c0_i32, %c0_i32_0 : i32, i32
  }
  func.func @transform_2(%arg0: i32) -> (i32, i32) {
    %c0_i32 = arith.constant 0 : i32
    %c0_i32_0 = arith.constant 0 : i32
    %c0_i32_1 = arith.constant 0 : i32
    return %c0_i32, %c0_i32_0 : i32, i32
  }
  func.func @transform_3(%arg0: i32) -> (i32, i32) {
    %c0_i32 = arith.constant 0 : i32
    %c0_i32_0 = arith.constant 0 : i32
    return %arg0, %c0_i32 : i32, i32
  }
}

module attributes {stable_mosaic.version = 11 : i64} {
  func.func @_matmul_bias_relu_kernel(%arg0: i32, %arg1: memref<2x576xbf16, #tpu.memory_space<vmem>>, %arg2: memref<576x64xbf16, #tpu.memory_space<vmem>>, %arg3: memref<1x64xf32, #tpu.memory_space<vmem>>, %arg4: memref<2x64xbf16, #tpu.memory_space<vmem>>) attributes {dimension_semantics = [#tpu.dimension_semantics<parallel>], iteration_bounds = array<i64: 1>, scalar_prefetch = 0 : i64, scratch_operands = 0 : i64, tpu.core_type = #tpu.core_type<tc>, window_params = [{transform_indices = @transform_0, window_bounds = array<i64: 2, 576>}, {pipeline_mode = #tpu.pipeline_mode<synchronous>, transform_indices = @transform_1, window_bounds = array<i64: 576, 64>}, {pipeline_mode = #tpu.pipeline_mode<synchronous>, transform_indices = @transform_2, window_bounds = array<i64: 1, 64>}, {transform_indices = @transform_3, window_bounds = array<i64: 2, 64>}]} {
    %c0 = arith.constant 0 : index
    %c0_0 = arith.constant 0 : index
    %0 = vector.load %arg1[%c0, %c0_0] : memref<2x576xbf16, #tpu.memory_space<vmem>>, vector<2x576xbf16>
    %c0_1 = arith.constant 0 : index
    %c0_2 = arith.constant 0 : index
    %1 = vector.load %arg2[%c0_1, %c0_2] : memref<576x64xbf16, #tpu.memory_space<vmem>>, vector<576x64xbf16>
    %cst = arith.constant dense<0.000000e+00> : vector<2x64xf32>
    %2 = tpu.matmul %0, %1, %cst {dimension_numbers = #tpu.dot_dimension_numbers<[1], [0], [0], [1], [0, 0, 1, 1], [], []>} : vector<2x576xbf16>, vector<576x64xbf16>, vector<2x64xf32> -> vector<2x64xf32>
    %c0_3 = arith.constant 0 : index
    %c0_4 = arith.constant 0 : index
    %3 = vector.load %arg3[%c0_3, %c0_4] : memref<1x64xf32, #tpu.memory_space<vmem>>, vector<1x64xf32>
    %4 = vector.broadcast %3 : vector<1x64xf32> to vector<2x64xf32>
    %5 = arith.addf %2, %4 : vector<2x64xf32>
    %cst_5 = arith.constant 0.000000e+00 : f32
    %6 = vector.broadcast %cst_5 : f32 to vector<2x64xf32>
    %7 = arith.maximumf %5, %6 : vector<2x64xf32>
    %8 = arith.truncf %7 : vector<2x64xf32> to vector<2x64xbf16>
    %c0_6 = arith.constant 0 : index
    %c0_7 = arith.constant 0 : index
    %9 = vector.load %arg4[%c0_6, %c0_7] : memref<2x64xbf16, #tpu.memory_space<vmem>>, vector<2x64xbf16>
    tpu.vector_store %arg4[%c0_6, %c0_7], %8 {strides = array<i32>} : memref<2x64xbf16, #tpu.memory_space<vmem>>, vector<2x64xbf16>,
    return
  }
  func.func @transform_0(%arg0: i32) -> (i32, i32) {
    %c0_i32 = arith.constant 0 : i32
    %c0_i32_0 = arith.constant 0 : i32
    return %arg0, %c0_i32 : i32, i32
  }
  func.func @transform_1(%arg0: i32) -> (i32, i32) {
    %c0_i32 = arith.constant 0 : i32
    %c0_i32_0 = arith.constant 0 : i32
    %c0_i32_1 = arith.constant 0 : i32
    return %c0_i32, %c0_i32_0 : i32, i32
  }
  func.func @transform_2(%arg0: i32) -> (i32, i32) {
    %c0_i32 = arith.constant 0 : i32
    %c0_i32_0 = arith.constant 0 : i32
    %c0_i32_1 = arith.constant 0 : i32
    return %c0_i32, %c0_i32_0 : i32, i32
  }
  func.func @transform_3(%arg0: i32) -> (i32, i32) {
    %c0_i32 = arith.constant 0 : i32
    %c0_i32_0 = arith.constant 0 : i32
    return %arg0, %c0_i32 : i32, i32
  }
}

module attributes {stable_mosaic.version = 11 : i64} {
  func.func @_head_logits_kernel(%arg0: i32, %arg1: memref<2x64xbf16, #tpu.memory_space<vmem>>, %arg2: memref<64x1024xbf16, #tpu.memory_space<vmem>>, %arg3: memref<1x1024xf32, #tpu.memory_space<vmem>>, %arg4: memref<1024x128xbf16, #tpu.memory_space<vmem>>, %arg5: memref<1x128xf32, #tpu.memory_space<vmem>>, %arg6: memref<2x128xf32, #tpu.memory_space<vmem>>) attributes {dimension_semantics = [#tpu.dimension_semantics<parallel>], iteration_bounds = array<i64: 1>, scalar_prefetch = 0 : i64, scratch_operands = 0 : i64, tpu.core_type = #tpu.core_type<tc>, window_params = [{transform_indices = @transform_0, window_bounds = array<i64: 2, 64>}, {pipeline_mode = #tpu.pipeline_mode<synchronous>, transform_indices = @transform_1, window_bounds = array<i64: 64, 1024>}, {pipeline_mode = #tpu.pipeline_mode<synchronous>, transform_indices = @transform_2, window_bounds = array<i64: 1, 1024>}, {pipeline_mode = #tpu.pipeline_mode<synchronous>, transform_indices = @transform_3, window_bounds = array<i64: 1024, 128>}, {pipeline_mode = #tpu.pipeline_mode<synchronous>, transform_indices = @transform_4, window_bounds = array<i64: 1, 128>}, {transform_indices = @transform_5, window_bounds = array<i64: 2, 128>}]} {
    %c0 = arith.constant 0 : index
    %c0_0 = arith.constant 0 : index
    %0 = vector.load %arg1[%c0, %c0_0] : memref<2x64xbf16, #tpu.memory_space<vmem>>, vector<2x64xbf16>
    %c0_1 = arith.constant 0 : index
    %c0_2 = arith.constant 0 : index
    %1 = vector.load %arg2[%c0_1, %c0_2] : memref<64x1024xbf16, #tpu.memory_space<vmem>>, vector<64x1024xbf16>
    %cst = arith.constant dense<0.000000e+00> : vector<2x1024xf32>
    %2 = tpu.matmul %0, %1, %cst {dimension_numbers = #tpu.dot_dimension_numbers<[1], [0], [0], [1], [0, 0, 1, 1], [], []>} : vector<2x64xbf16>, vector<64x1024xbf16>, vector<2x1024xf32> -> vector<2x1024xf32>
    %c0_3 = arith.constant 0 : index
    %c0_4 = arith.constant 0 : index
    %3 = vector.load %arg3[%c0_3, %c0_4] : memref<1x1024xf32, #tpu.memory_space<vmem>>, vector<1x1024xf32>
    %4 = vector.broadcast %3 : vector<1x1024xf32> to vector<2x1024xf32>
    %5 = arith.addf %2, %4 : vector<2x1024xf32>
    %cst_5 = arith.constant 0.000000e+00 : f32
    %6 = vector.broadcast %cst_5 : f32 to vector<2x1024xf32>
    %7 = arith.maximumf %5, %6 : vector<2x1024xf32>
    %8 = arith.truncf %7 : vector<2x1024xf32> to vector<2x1024xbf16>
    %c0_6 = arith.constant 0 : index
    %c0_7 = arith.constant 0 : index
    %9 = vector.load %arg4[%c0_6, %c0_7] : memref<1024x128xbf16, #tpu.memory_space<vmem>>, vector<1024x128xbf16>
    %cst_8 = arith.constant dense<0.000000e+00> : vector<2x128xf32>
    %10 = tpu.matmul %8, %9, %cst_8 {dimension_numbers = #tpu.dot_dimension_numbers<[1], [0], [0], [1], [0, 0, 1, 1], [], []>} : vector<2x1024xbf16>, vector<1024x128xbf16>, vector<2x128xf32> -> vector<2x128xf32>
    %c0_9 = arith.constant 0 : index
    %c0_10 = arith.constant 0 : index
    %11 = vector.load %arg5[%c0_9, %c0_10] : memref<1x128xf32, #tpu.memory_space<vmem>>, vector<1x128xf32>
    %12 = vector.broadcast %11 : vector<1x128xf32> to vector<2x128xf32>
    %13 = arith.addf %10, %12 : vector<2x128xf32>
    %c0_11 = arith.constant 0 : index
    %c0_12 = arith.constant 0 : index
    %14 = vector.load %arg6[%c0_11, %c0_12] : memref<2x128xf32, #tpu.memory_space<vmem>>, vector<2x128xf32>
    tpu.vector_store %arg6[%c0_11, %c0_12], %13 {strides = array<i32>} : memref<2x128xf32, #tpu.memory_space<vmem>>, vector<2x128xf32>,
    return
  }
  func.func @transform_0(%arg0: i32) -> (i32, i32) {
    %c0_i32 = arith.constant 0 : i32
    %c0_i32_0 = arith.constant 0 : i32
    return %arg0, %c0_i32 : i32, i32
  }
  func.func @transform_1(%arg0: i32) -> (i32, i32) {
    %c0_i32 = arith.constant 0 : i32
    %c0_i32_0 = arith.constant 0 : i32
    %c0_i32_1 = arith.constant 0 : i32
    return %c0_i32, %c0_i32_0 : i32, i32
  }
  func.func @transform_2(%arg0: i32) -> (i32, i32) {
    %c0_i32 = arith.constant 0 : i32
    %c0_i32_0 = arith.constant 0 : i32
    %c0_i32_1 = arith.constant 0 : i32
    return %c0_i32, %c0_i32_0 : i32, i32
  }
  func.func @transform_3(%arg0: i32) -> (i32, i32) {
    %c0_i32 = arith.constant 0 : i32
    %c0_i32_0 = arith.constant 0 : i32
    %c0_i32_1 = arith.constant 0 : i32
    return %c0_i32, %c0_i32_0 : i32, i32
  }
  func.func @transform_4(%arg0: i32) -> (i32, i32) {
    %c0_i32 = arith.constant 0 : i32
    %c0_i32_0 = arith.constant 0 : i32
    %c0_i32_1 = arith.constant 0 : i32
    return %c0_i32, %c0_i32_0 : i32, i32
  }
  func.func @transform_5(%arg0: i32) -> (i32, i32) {
    %c0_i32 = arith.constant 0 : i32
    %c0_i32_0 = arith.constant 0 : i32
    return %arg0, %c0_i32 : i32, i32
  }
}

</mosaic_0001>

<bundles_post_ra>
// kernel: dueling_dqn_forward.4
= control target key start
LH: loop header
LB: loop body
LE: loop exit
PB: predicated region body
PF: predicated region fallthrough
CT: control target
= control target key end

     0   :  { %vm423_vm0 = vcmask 257024   ;;  %s830_s1 = inlined_call_operand.vmem [shape: bf16[256,32], index: 1, kind: input, shape index: {}]   ;;  %s831_s0 = inlined_call_operand.vmem [shape: bf16[128,256], index: 0, kind: input, shape index: {}]   ;;  %s832_s2 = inlined_call_operand.vmem [shape: f32[1,32], index: 2, kind: input, shape index: {}]   ;;  %s833_s3 = inlined_call_operand.vmem [shape: bf16[128,32], index: 3, kind: output, shape index: {}]  }
   0x1   :  { %v589_v0 = vld [vmem:[%s830_s1 + $0x40] sm:$0xff]   ;;  %v591_v2 = vld [vmem:[%s830_s1 + $0x48] sm:$0xff]   ;;  %v593_v4 = vld [vmem:[%s830_s1 + $0x50] sm:$0xff]  }
   0x2   :  { %v590_v1 = vld [vmem:[%s830_s1] sm:$0xff]   ;;  %509 = vmatprep.subr.bf16.mxu0 %v589_v0  ;;  %573 = vmatprep.subr.bf16.mxu1 %v589_v0  ;;  %v592_v3 = vld [vmem:[%s830_s1 + $0x8] sm:$0xff]   ;;  %v594_v5 = vld [vmem:[%s830_s1 + $0x10] sm:$0xff]  }
   0x3   :  { %510 = vmatpush3.bf16.msra.mxu0 %v590_v1  ;;  %581 = vmatpush3.bf16.msra.mxu1 %v590_v1  ;;  %v595_v6 = vld [vmem:[%s830_s1 + $0x58] sm:$0xff]   ;;  %v597_v8 = vld [vmem:[%s830_s1 + $0x60] sm:$0xff]   ;;  %v599_v10 = vld [vmem:[%s830_s1 + $0x68] sm:$0xff]  }
   0x4   :  { %511 = vmatprep.subr.bf16.mxu0 %v591_v2  ;;  %574 = vmatprep.subr.bf16.mxu1 %v591_v2  ;;  %v596_v7 = vld [vmem:[%s830_s1 + $0x18] sm:$0xff]   ;;  %v598_v9 = vld [vmem:[%s830_s1 + $0x20] sm:$0xff]   ;;  %v600_v13 = vld [vmem:[%s830_s1 + $0x28] sm:$0xff]  }
   0x5   :  { %v607_v11 = vld [vmem:[%s831_s0 + $0x4] ss:$8 sps:$4 sm:$0xff]   ;;  %v601_v14 = vld [vmem:[%s830_s1 + $0x70] sm:$0xff]   ;;  %v603_v16 = vld [vmem:[%s830_s1 + $0x78] sm:$0xff]  }
   0x6   :  { %v610_v12 = vld [vmem:[%s831_s0 + $0x44] ss:$8 sps:$4 sm:$0xff]   ;;  %278 = vmatprep.mubr.bf16.mxu0 %v607_v11  ;;  %v602_v15 = vld [vmem:[%s830_s1 + $0x30] sm:$0xff]   ;;  %v604_v17 = vld [vmem:[%s830_s1 + $0x38] sm:$0xff]  }
   0x7   :  { %512 = vmatpush3.bf16.msra.mxu0 %v592_v3  ;;  %582 = vmatpush3.bf16.msra.mxu1 %v592_v3  ;;  %v605_v18 = vld [vmem:[%s831_s0] ss:$8 sps:$4 sm:$0xff]   ;;  %v611_v20 = vld [vmem:[%s831_s0 + $0x14] ss:$8 sps:$4 sm:$0xff]   ;;  %v615_v22 = vld [vmem:[%s831_s0 + $0x10] ss:$8 sps:$4 sm:$0xff]  }
   0x8   :  { %513 = vmatprep.subr.bf16.mxu0 %v593_v4  ;;  %575 = vmatprep.subr.bf16.mxu1 %v593_v4  ;;  %v608_v19 = vld [vmem:[%s831_s0 + $0x40] ss:$8 sps:$4 sm:$0xff]   ;;  %v613_v21 = vld [vmem:[%s831_s0 + $0x54] ss:$8 sps:$4 sm:$0xff]   ;;  %v616_v23 = vld [vmem:[%s831_s0 + $0x50] ss:$8 sps:$4 sm:$0xff]  }
   0x9   :  { %310 = vmatprep.mubr.bf16.mxu1 %v610_v12  ;;  %v617_v24 = vld [vmem:[%s831_s0 + $0x24] ss:$8 sps:$4 sm:$0xff]   ;;  %v621_v26 = vld [vmem:[%s831_s0 + $0x20] ss:$8 sps:$4 sm:$0xff]   ;;  %v623_v28 = vld [vmem:[%s831_s0 + $0x34] ss:$8 sps:$4 sm:$0xff]  }
   0xa   :  { %v619_v25 = vld [vmem:[%s831_s0 + $0x64] ss:$8 sps:$4 sm:$0xff]   ;;  %v622_v27 = vld [vmem:[%s831_s0 + $0x60] ss:$8 sps:$4 sm:$0xff]   ;;  %v625_v29 = vld [vmem:[%s831_s0 + $0x74] ss:$8 sps:$4 sm:$0xff]  }
   0xb   :  { %514 = vmatpush3.bf16.msra.mxu0 %v594_v5  ;;  %583 = vmatpush3.bf16.msra.mxu1 %v594_v5  ;;  %v627_v30 = vld [vmem:[%s831_s0 + $0x30] ss:$8 sps:$4 sm:$0xff]   ;;  %v748_v34 = vld [vmem:[%s832_s2] ss:$0 sm:$0xff] }
   0xc   :  { %515 = vmatprep.subr.bf16.mxu0 %v595_v6  ;;  %576 = vmatprep.subr.bf16.mxu1 %v595_v6  ;;  %v628_v31 = vld [vmem:[%s831_s0 + $0x70] ss:$8 sps:$4 sm:$0xff]  }
   0xf   :  { %516 = vmatpush3.bf16.msra.mxu0 %v596_v7  ;;  %584 = vmatpush3.bf16.msra.mxu1 %v596_v7 }
  0x10   :  { %517 = vmatprep.subr.bf16.mxu0 %v597_v8  ;;  %577 = vmatprep.subr.bf16.mxu1 %v597_v8 }
  0x13   :  { %518 = vmatpush3.bf16.msra.mxu0 %v598_v9  ;;  %585 = vmatpush3.bf16.msra.mxu1 %v598_v9 }
  0x14   :  { %519 = vmatprep.subr.bf16.mxu0 %v599_v10  ;;  %578 = vmatprep.subr.bf16.mxu1 %v599_v10 }
  0x17   :  { %520 = vmatpush3.bf16.msra.mxu0 %v600_v13  ;;  %586 = vmatpush3.bf16.msra.mxu1 %v600_v13 }
  0x18   :  { %521 = vmatprep.subr.bf16.mxu0 %v601_v14  ;;  %579 = vmatprep.subr.bf16.mxu1 %v601_v14 }
  0x1b   :  { %522 = vmatpush3.bf16.msra.mxu0 %v602_v15  ;;  %587 = vmatpush3.bf16.msra.mxu1 %v602_v15 }
  0x1c   :  { %523 = vmatprep.subr.bf16.mxu0 %v603_v16  ;;  %580 = vmatprep.subr.bf16.mxu1 %v603_v16 }
  0x1f   :  { %524 = vmatpush3.bf16.msra.mxu0 %v604_v17  ;;  %588 = vmatpush3.bf16.msra.mxu1 %v604_v17 }
  0x22   :  { %279 = vmatmul.mubr.bf16.vlgmr.msra.gmra.mrb[0].mxu0 %v605_v18  ;;  %311 = vmatmul.mubr.bf16.vlgmr.msra.gmra.mrb[0].mxu1 %v608_v19 }
  0x23   :  { %286 = vmatprep.mubr.bf16.mxu0 %v611_v20  ;;  %318 = vmatprep.mubr.bf16.mxu1 %v613_v21 }
  0x2a   :  { %287 = vmatmul.mubr.bf16.gmra.mrb[4].mxu0 %v615_v22  ;;  %319 = vmatmul.mubr.bf16.gmra.mrb[4].mxu1 %v616_v23 }
  0x2b   :  { %294 = vmatprep.mubr.bf16.mxu0 %v617_v24  ;;  %326 = vmatprep.mubr.bf16.mxu1 %v619_v25 }
  0x32   :  { %295 = vmatmul.mubr.bf16.gmra.mrb[8].mxu0 %v621_v26  ;;  %327 = vmatmul.mubr.bf16.gmra.mrb[8].mxu1 %v622_v27 }
  0x33   :  { %302 = vmatprep.mubr.bf16.mxu0 %v623_v28  ;;  %334 = vmatprep.mubr.bf16.mxu1 %v625_v29 }
  0x3a   :  { %303 = vmatmul.mubr.bf16.gmra.mrb[12].mxu0 %v627_v30  ;;  %335 = vmatmul.mubr.bf16.gmra.mrb[12].mxu1 %v628_v31 }
  0xf5   :  { %v525_v32 = vpop.f32.mrb[0].mxu0  ;;  %v549_v33 = vpop.f32.mrb[0].mxu1 }
  0xf6   :  { %v526_v35 = vpop.f32.mrb[1].mxu0  ;;  %v550_v36 = vpop.f32.mrb[1].mxu1 }
  0xf7   :  { %v527_v37 = vadd.f32 %v526_v35, %v525_v32  ;;  %v551_v38 = vadd.f32 %v550_v36, %v549_v33  ;;  %v528_v39 = vpop.f32.mrb[2].mxu0  ;;  %v552_v40 = vpop.f32.mrb[2].mxu1 }
  0xf8   :  { %v529_v41 = vpop.f32.mrb[3].mxu0  ;;  %v553_v42 = vpop.f32.mrb[3].mxu1 }
  0xf9   :  { %v281_v43 = vadd.f32 %v527_v37, %v748_v34  ;;  %v313_v44 = vadd.f32 %v551_v38, %v748_v34  ;;  %v530_v45 = vadd.f32 %v529_v41, %v528_v39  ;;  %v554_v46 = vadd.f32 %v553_v42, %v552_v40 }
  0xfb   :  { %v343_v47 = vmax.f32 %v281_v43, 0.0  ;;  %v351_v48 = vmax.f32 %v313_v44, 0.0  ;;  %v284_v49 = vadd.f32 %v530_v45, %v748_v34  ;;  %v316_v50 = vadd.f32 %v554_v46, %v748_v34 }
  0xfd   :  { %v493_v51 = vpack.c.bf16 %v343_v47, %v343_v47  ;;  %v501_v52 = vpack.c.bf16 %v351_v48, %v351_v48  ;;  %v344_v53 = vmax.f32 %v284_v49, 0.0  ;;  %v352_v54 = vmax.f32 %v316_v50, 0.0  ;;  %v531_v55 = vpop.f32.mrb[4].mxu0  ;;  %v555_v56 = vpop.f32.mrb[4].mxu1 }
  0xfe   :  { %v532_v57 = vpop.f32.mrb[5].mxu0  ;;  %v556_v58 = vpop.f32.mrb[5].mxu1 }
  0xff   :  { %424 = vst.msk [vmem:[%s833_s3] sm:$0xf] %vm423_vm0, %v493_v51  ;;  %432 = vst.msk [vmem:[%s833_s3 + $0x20] sm:$0xf] %vm423_vm0, %v501_v52  ;;  %v494_v59 = vpack.c.bf16 %v344_v53, %v344_v53  ;;  %v502_v60 = vpack.c.bf16 %v352_v54, %v352_v54  ;;  %v533_v61 = vadd.f32 %v532_v57, %v531_v55  ;;  %v534_v63 = vpop.f32.mrb[6].mxu0  ;;  %v558_v0 = vpop.f32.mrb[6].mxu1 }
 0x100   :  { %v557_v62 = vadd.f32 %v556_v58, %v555_v56  ;;  %v535_v1 = vpop.f32.mrb[7].mxu0  ;;  %v559_v2 = vpop.f32.mrb[7].mxu1 }
 0x101   :  { %425 = vst.msk [vmem:[%s833_s3 + $0x4] sm:$0xf] %vm423_vm0, %v494_v59  ;;  %433 = vst.msk [vmem:[%s833_s3 + $0x24] sm:$0xf] %vm423_vm0, %v502_v60  ;;  %v289_v3 = vadd.f32 %v533_v61, %v748_v34  ;;  %v536_v5 = vadd.f32 %v535_v1, %v534_v63  ;;  %v560_v6 = vadd.f32 %v559_v2, %v558_v0 }
 0x102   :  { %v321_v4 = vadd.f32 %v557_v62, %v748_v34 }
 0x103   :  { %v345_v7 = vmax.f32 %v289_v3, 0.0  ;;  %v292_v9 = vadd.f32 %v536_v5, %v748_v34  ;;  %v324_v10 = vadd.f32 %v560_v6, %v748_v34 }
 0x104   :  { %v353_v8 = vmax.f32 %v321_v4, 0.0 }
 0x105   :  { %v495_v11 = vpack.c.bf16 %v345_v7, %v345_v7  ;;  %v346_v13 = vmax.f32 %v292_v9, 0.0  ;;  %v354_v14 = vmax.f32 %v324_v10, 0.0  ;;  %v537_v15 = vpop.f32.mrb[8].mxu0  ;;  %v561_v16 = vpop.f32.mrb[8].mxu1 }
 0x106   :  { %v503_v12 = vpack.c.bf16 %v353_v8, %v353_v8  ;;  %v538_v17 = vpop.f32.mrb[9].mxu0  ;;  %v562_v18 = vpop.f32.mrb[9].mxu1 }
 0x107   :  { %426 = vst.msk [vmem:[%s833_s3 + $0x8] sm:$0xf] %vm423_vm0, %v495_v11  ;;  %v496_v19 = vpack.c.bf16 %v346_v13, %v346_v13  ;;  %v504_v20 = vpack.c.bf16 %v354_v14, %v354_v14  ;;  %v539_v21 = vadd.f32 %v538_v17, %v537_v15  ;;  %v563_v22 = vadd.f32 %v562_v18, %v561_v16  ;;  %v540_v23 = vpop.f32.mrb[10].mxu0  ;;  %v564_v24 = vpop.f32.mrb[10].mxu1 }
 0x108   :  { %434 = vst.msk [vmem:[%s833_s3 + $0x28] sm:$0xf] %vm423_vm0, %v503_v12  ;;  %v541_v25 = vpop.f32.mrb[11].mxu0  ;;  %v565_v26 = vpop.f32.mrb[11].mxu1 }
 0x109   :  { %427 = vst.msk [vmem:[%s833_s3 + $0xc] sm:$0xf] %vm423_vm0, %v496_v19  ;;  %435 = vst.msk [vmem:[%s833_s3 + $0x2c] sm:$0xf] %vm423_vm0, %v504_v20  ;;  %v297_v27 = vadd.f32 %v539_v21, %v748_v34  ;;  %v329_v28 = vadd.f32 %v563_v22, %v748_v34  ;;  %v542_v29 = vadd.f32 %v541_v25, %v540_v23 }
 0x10a   :  { %v566_v30 = vadd.f32 %v565_v26, %v564_v24 }
 0x10b   :  { %v347_v31 = vmax.f32 %v297_v27, 0.0  ;;  %v355_v32 = vmax.f32 %v329_v28, 0.0  ;;  %v300_v33 = vadd.f32 %v542_v29, %v748_v34 }
 0x10c   :  { %v332_v35 = vadd.f32 %v566_v30, %v748_v34 }
 0x10d   :  { %v497_v36 = vpack.c.bf16 %v347_v31, %v347_v31  ;;  %v505_v37 = vpack.c.bf16 %v355_v32, %v355_v32  ;;  %v348_v38 = vmax.f32 %v300_v33, 0.0  ;;  %v543_v40 = vpop.f32.mrb[12].mxu0  ;;  %v567_v41 = vpop.f32.mrb[12].mxu1 }
 0x10e   :  { %v356_v39 = vmax.f32 %v332_v35, 0.0  ;;  %v544_v42 = vpop.f32.mrb[13].mxu0  ;;  %v568_v43 = vpop.f32.mrb[13].mxu1 }
 0x10f   :  { %428 = vst.msk [vmem:[%s833_s3 + $0x10] sm:$0xf] %vm423_vm0, %v497_v36  ;;  %436 = vst.msk [vmem:[%s833_s3 + $0x30] sm:$0xf] %vm423_vm0, %v505_v37  ;;  %v498_v44 = vpack.c.bf16 %v348_v38, %v348_v38  ;;  %v545_v46 = vadd.f32 %v544_v42, %v543_v40  ;;  %v569_v47 = vadd.f32 %v568_v43, %v567_v41  ;;  %v546_v48 = vpop.f32.mrb[14].mxu0  ;;  %v570_v49 = vpop.f32.mrb[14].mxu1 }
 0x110   :  { %v506_v45 = vpack.c.bf16 %v356_v39, %v356_v39  ;;  %v547_v50 = vpop.f32.mrb[15].mxu0  ;;  %v571_v51 = vpop.f32.mrb[15].mxu1 }
 0x111   :  { %429 = vst.msk [vmem:[%s833_s3 + $0x14] sm:$0xf] %vm423_vm0, %v498_v44  ;;  %v305_v52 = vadd.f32 %v545_v46, %v748_v34  ;;  %v337_v53 = vadd.f32 %v569_v47, %v748_v34  ;;  %v548_v54 = vadd.f32 %v547_v50, %v546_v48  ;;  %v572_v55 = vadd.f32 %v571_v51, %v570_v49 }
 0x112   :  { %437 = vst.msk [vmem:[%s833_s3 + $0x34] sm:$0xf] %vm423_vm0, %v506_v45 }
 0x113   :  { %v349_v56 = vmax.f32 %v305_v52, 0.0  ;;  %v357_v57 = vmax.f32 %v337_v53, 0.0  ;;  %v308_v58 = vadd.f32 %v548_v54, %v748_v34  ;;  %v340_v59 = vadd.f32 %v572_v55, %v748_v34 }
 0x115   :  { %v499_v60 = vpack.c.bf16 %v349_v56, %v349_v56  ;;  %v507_v61 = vpack.c.bf16 %v357_v57, %v357_v57  ;;  %v350_v62 = vmax.f32 %v308_v58, 0.0  ;;  %v358_v63 = vmax.f32 %v340_v59, 0.0 }
 0x117   :  { %430 = vst.msk [vmem:[%s833_s3 + $0x18] sm:$0xf] %vm423_vm0, %v499_v60  ;;  %438 = vst.msk [vmem:[%s833_s3 + $0x38] sm:$0xf] %vm423_vm0, %v507_v61  ;;  %v500_v0 = vpack.c.bf16 %v350_v62, %v350_v62  ;;  %v508_v1 = vpack.c.bf16 %v358_v63, %v358_v63 }
 0x119   :  { %431 = vst.msk [vmem:[%s833_s3 + $0x1c] sm:$0xf] %vm423_vm0, %v500_v0  ;;  %439 = vst.msk [vmem:[%s833_s3 + $0x3c] sm:$0xf] %vm423_vm0, %v508_v1 }

// kernel: dueling_dqn_forward.5
= control target key start
LH: loop header
LB: loop body
LE: loop exit
PB: predicated region body
PF: predicated region fallthrough
CT: control target
= control target key end

     0   :  { %vm430_vm0 = vcmask 519168   ;;  %vm433_vm1 = vcmask 516096   ;;  %s730_s1 = inlined_call_operand.vmem [shape: bf16[512,64], index: 1, kind: input, shape index: {}]   ;;  %s731_s0 = inlined_call_operand.vmem [shape: bf16[18,512], index: 0, kind: input, shape index: {}]   ;;  %s732_s2 = inlined_call_operand.vmem [shape: f32[1,64], index: 2, kind: input, shape index: {}]   ;;  %s733_s3 = inlined_call_operand.vmem [shape: bf16[18,64], index: 3, kind: output, shape index: {}]  }
   0x1   :  { %v542_v0 = vld [vmem:[%s730_s1 + $0x40] sm:$0xff]   ;;  %v546_v4 = vld [vmem:[%s730_s1 + $0x48] sm:$0xff]   ;;  %v550_v8 = vld [vmem:[%s730_s1 + $0x50] sm:$0xff]  }
   0x2   :  { %v543_v1 = vld [vmem:[%s730_s1 + $0xc0] sm:$0xff]   ;;  %486 = vmatprep.subr.bf16.mxu0 %v542_v0  ;;  %v547_v5 = vld [vmem:[%s730_s1 + $0xc8] sm:$0xff]   ;;  %v551_v9 = vld [vmem:[%s730_s1 + $0xd0] sm:$0xff]  }
   0x3   :  { %v544_v2 = vld [vmem:[%s730_s1] sm:$0xff]   ;;  %514 = vmatprep.subr.bf16.mxu1 %v543_v1  ;;  %v548_v6 = vld [vmem:[%s730_s1 + $0x8] sm:$0xff]   ;;  %v552_v10 = vld [vmem:[%s730_s1 + $0x10] sm:$0xff]  }
   0x4   :  { %v545_v3 = vld [vmem:[%s730_s1 + $0x80] sm:$0xff]   ;;  %487 = vmatpush3.bf16.msra.mxu0 %v544_v2  ;;  %v549_v7 = vld [vmem:[%s730_s1 + $0x88] sm:$0xff]   ;;  %v553_v11 = vld [vmem:[%s730_s1 + $0x90] sm:$0xff]  }
   0x5   :  { %515 = vmatpush3.bf16.msra.mxu1 %v545_v3  ;;  %488 = vmatprep.subr.bf16.mxu0 %v546_v4  ;;  %v554_v12 = vld [vmem:[%s730_s1 + $0x58] sm:$0xff]   ;;  %v558_v16 = vld [vmem:[%s730_s1 + $0x60] sm:$0xff]   ;;  %v562_v20 = vld [vmem:[%s730_s1 + $0x68] sm:$0xff]  }
   0x6   :  { %516 = vmatprep.subr.bf16.mxu1 %v547_v5  ;;  %v555_v13 = vld [vmem:[%s730_s1 + $0xd8] sm:$0xff]   ;;  %v559_v17 = vld [vmem:[%s730_s1 + $0xe0] sm:$0xff]   ;;  %v563_v21 = vld [vmem:[%s730_s1 + $0xe8] sm:$0xff]  }
   0x7   :  { %v556_v14 = vld [vmem:[%s730_s1 + $0x18] sm:$0xff]   ;;  %v560_v18 = vld [vmem:[%s730_s1 + $0x20] sm:$0xff]   ;;  %v564_v22 = vld [vmem:[%s730_s1 + $0x28] sm:$0xff]  }
   0x8   :  { %489 = vmatpush3.bf16.msra.mxu0 %v548_v6  ;;  %v557_v15 = vld [vmem:[%s730_s1 + $0x98] sm:$0xff]   ;;  %v561_v19 = vld [vmem:[%s730_s1 + $0xa0] sm:$0xff]   ;;  %v565_v23 = vld [vmem:[%s730_s1 + $0xa8] sm:$0xff]  }
   0x9   :  { %517 = vmatpush3.bf16.msra.mxu1 %v549_v7  ;;  %490 = vmatprep.subr.bf16.mxu0 %v550_v8  ;;  %v566_v24 = vld [vmem:[%s730_s1 + $0x70] sm:$0xff]   ;;  %v570_v28 = vld [vmem:[%s730_s1 + $0x78] sm:$0xff]   ;;  %v19_v36 = vld [vmem:[%s731_s0 + $0x20] sm:$0x11] }
   0xa   :  { %518 = vmatprep.subr.bf16.mxu1 %v551_v9  ;;  %v567_v25 = vld [vmem:[%s730_s1 + $0xf0] sm:$0xff]   ;;  %v571_v29 = vld [vmem:[%s730_s1 + $0xf8] sm:$0xff]   ;;  %v445_v37 = vcombine.high %v19_v36, %v19_v36  ;;  %v20_v38 = vld [vmem:[%s731_s0 + $0x28] sm:$0x11]  ;;  %v444_v40 = vcombine.low %v19_v36, %v19_v36 }
   0xb   :  { %v568_v26 = vld [vmem:[%s730_s1 + $0x30] sm:$0xff]   ;;  %v572_v30 = vld [vmem:[%s730_s1 + $0x38] sm:$0xff]   ;;  %v447_v39 = vcombine.high %v20_v38, %v20_v38  ;;  %v446_v41 = vcombine.low %v20_v38, %v20_v38  ;;  %v439_v44 = vld [vmem:[%s732_s2] ss:$0 sm:$0xff] }
   0xc   :  { %491 = vmatpush3.bf16.msra.mxu0 %v552_v10  ;;  %v569_v27 = vld [vmem:[%s730_s1 + $0xb0] sm:$0xff]   ;;  %v573_v31 = vld [vmem:[%s730_s1 + $0xb8] sm:$0xff]  }
   0xd   :  { %519 = vmatpush3.bf16.msra.mxu1 %v553_v11  ;;  %492 = vmatprep.subr.bf16.mxu0 %v554_v12  ;;  %v574_v32 = vld [vmem:[%s731_s0] ss:$16 sps:$4 sm:$0xff]   ;;  %v576_v33 = vld [vmem:[%s731_s0 + $0x4] ss:$16 sps:$4 sm:$0xff]   ;;  %v577_v34 = vld [vmem:[%s731_s0 + $0x8] ss:$16 sps:$4 sm:$0xff]  }
   0xe   :  { %520 = vmatprep.subr.bf16.mxu1 %v555_v13  ;;  %v579_v35 = vld [vmem:[%s731_s0 + $0xc] ss:$16 sps:$4 sm:$0xff]   ;;  %350 = vmatprep.mubr.bf16.mxu0 %v576_v33 }
   0xf   :  { %398 = vmatprep.mubr.bf16.mxu1 %v579_v35 }
  0x10   :  { %493 = vmatpush3.bf16.msra.mxu0 %v556_v14 }
  0x11   :  { %521 = vmatpush3.bf16.msra.mxu1 %v557_v15  ;;  %494 = vmatprep.subr.bf16.mxu0 %v558_v16 }
  0x12   :  { %522 = vmatprep.subr.bf16.mxu1 %v559_v17 }
  0x14   :  { %495 = vmatpush3.bf16.msra.mxu0 %v560_v18 }
  0x15   :  { %523 = vmatpush3.bf16.msra.mxu1 %v561_v19  ;;  %496 = vmatprep.subr.bf16.mxu0 %v562_v20 }
  0x16   :  { %524 = vmatprep.subr.bf16.mxu1 %v563_v21 }
  0x18   :  { %497 = vmatpush3.bf16.msra.mxu0 %v564_v22 }
  0x19   :  { %525 = vmatpush3.bf16.msra.mxu1 %v565_v23  ;;  %498 = vmatprep.subr.bf16.mxu0 %v566_v24 }
  0x1a   :  { %526 = vmatprep.subr.bf16.mxu1 %v567_v25 }
  0x1c   :  { %499 = vmatpush3.bf16.msra.mxu0 %v568_v26 }
  0x1d   :  { %527 = vmatpush3.bf16.msra.mxu1 %v569_v27  ;;  %500 = vmatprep.subr.bf16.mxu0 %v570_v28 }
  0x1e   :  { %528 = vmatprep.subr.bf16.mxu1 %v571_v29 }
  0x20   :  { %501 = vmatpush3.bf16.msra.mxu0 %v572_v30 }
  0x21   :  { %529 = vmatpush3.bf16.msra.mxu1 %v573_v31 }
  0x23   :  { %351 = vmatmul.mubr.bf16.vlgmr.msra.gmra.mrb[0].mxu0 %v574_v32 }
  0x24   :  { %399 = vmatmul.mubr.bf16.vlgmr.msra.gmra.mrb[0].mxu1 %v577_v34  ;;  %358 = vmatprep.mubr.bf16.mxu0 %v445_v37 }
  0x25   :  { %406 = vmatprep.mubr.bf16.mxu1 %v447_v39 }
  0x2b   :  { %359 = vmatmul.mubr.bf16.gmra.mrb[4].mxu0 %v444_v40 }
  0x2c   :  { %407 = vmatmul.mubr.bf16.gmra.mrb[4].mxu1 %v446_v41 }
  0xf6   :  { %v502_v42 = vpop.f32.mrb[0].mxu0 }
  0xf7   :  { %v530_v43 = vpop.f32.mrb[0].mxu1  ;;  %v503_v45 = vpop.f32.mrb[1].mxu0 }
  0xf8   :  { %v504_v46 = vadd.f32 %v503_v45, %v502_v42  ;;  %v531_v47 = vpop.f32.mrb[1].mxu1  ;;  %v505_v48 = vpop.f32.mrb[2].mxu0 }
  0xf9   :  { %v532_v49 = vadd.f32 %v531_v47, %v530_v43  ;;  %v533_v50 = vpop.f32.mrb[2].mxu1  ;;  %v506_v51 = vpop.f32.mrb[3].mxu0 }
  0xfa   :  { %v353_v52 = vadd.f32 %v504_v46, %v439_v44  ;;  %v507_v53 = vadd.f32 %v506_v51, %v505_v48  ;;  %v534_v54 = vpop.f32.mrb[3].mxu1 }
  0xfb   :  { %v535_v55 = vadd.f32 %v534_v54, %v533_v50 }
  0xfc   :  { %v401_v56 = vadd.f32 %v532_v49, %v353_v52  ;;  %v356_v57 = vadd.f32 %v507_v53, %v439_v44 }
  0xfe   :  { %v414_v58 = vmax.f32 %v401_v56, 0.0  ;;  %v404_v59 = vadd.f32 %v535_v55, %v356_v57  ;;  %v508_v60 = vpop.f32.mrb[4].mxu0 }
  0xff   :  { %v536_v61 = vpop.f32.mrb[4].mxu1  ;;  %v509_v62 = vpop.f32.mrb[5].mxu0 }
 0x100   :  { %v483_v63 = vpack.c.bf16 %v414_v58, %v414_v58  ;;  %v415_v0 = vmax.f32 %v404_v59, 0.0  ;;  %v510_v1 = vadd.f32 %v509_v62, %v508_v60  ;;  %v537_v2 = vpop.f32.mrb[5].mxu1  ;;  %v511_v3 = vpop.f32.mrb[6].mxu0 }
 0x101   :  { %v538_v4 = vadd.f32 %v537_v2, %v536_v61  ;;  %v539_v5 = vpop.f32.mrb[6].mxu1  ;;  %v512_v6 = vpop.f32.mrb[7].mxu0 }
 0x102   :  { %431 = vst.msk [vmem:[%s733_s3] sm:$0xf] %vm430_vm0, %v483_v63  ;;  %v484_v7 = vpack.c.bf16 %v415_v0, %v415_v0  ;;  %v361_v8 = vadd.f32 %v510_v1, %v439_v44  ;;  %v540_v9 = vpop.f32.mrb[7].mxu1 }
 0x104   :  { %432 = vst.msk [vmem:[%s733_s3 + $0x4] sm:$0xf] %vm430_vm0, %v484_v7  ;;  %v409_v10 = vadd.f32 %v538_v4, %v361_v8 }
 0x106   :  { %v416_v11 = vmax.f32 %v409_v10, 0.0 }
 0x108   :  { %v485_v12 = vpack.c.bf16 %v416_v11, %v416_v11 }
 0x10a   :  { %434 = vst.msk [vmem:[%s733_s3 + $0x8] sm:$0x1] %vm433_vm1, %v485_v12 }

// kernel: dueling_dqn_forward.6
= control target key start
LH: loop header
LB: loop body
LE: loop exit
PB: predicated region body
PF: predicated region fallthrough
CT: control target
= control target key end

     0   :  { %v626_v21 = vmov 1966171168   ;;  %v100_v23 = vlaneseq  ;;  %v627_v40 = vmov 0.0   ;;  %vm628_vm0 = vmmov 0   ;;  %s766_s1 = inlined_call_operand.vmem [shape: bf16[576,64], index: 1, kind: input, shape index: {}]   ;;  %s767_s0 = inlined_call_operand.vmem [shape: bf16[2,576], index: 0, kind: input, shape index: {}]   ;;  %s768_s2 = inlined_call_operand.vmem [shape: f32[1,64], index: 2, kind: input, shape index: {}]   ;;  %s769_s3 = inlined_call_operand.vmem [shape: bf16[2,64], index: 3, kind: output, shape index: {}]  }
   0x1   :  { %v589_v0 = vld [vmem:[%s766_s1 + $0x40] sm:$0xff]   ;;  %v593_v4 = vld [vmem:[%s766_s1 + $0x48] sm:$0xff]   ;;  %v597_v8 = vld [vmem:[%s766_s1 + $0x50] sm:$0xff]   ;;  %v98_v22 = vunpack.c.l.s4 %v626_v21  ;;  %vm355_vm1 = vcmask 523264   ;;  %vm481_vm2 = vcmask 516096  }
   0x2   :  { %v590_v1 = vld [vmem:[%s766_s1] sm:$0xff]   ;;  %525 = vmatprep.subr.bf16.mxu0 %v589_v0  ;;  %v594_v5 = vld [vmem:[%s766_s1 + $0x8] sm:$0xff]   ;;  %v598_v9 = vld [vmem:[%s766_s1 + $0x10] sm:$0xff]   ;;  %v101_v29 = vshrl.u32 %v100_v23, 7 }
   0x3   :  { %v591_v2 = vld [vmem:[%s766_s1 + $0xc0] sm:$0xff]   ;;  %526 = vmatpush3.bf16.msra.mxu0 %v590_v1  ;;  %v595_v6 = vld [vmem:[%s766_s1 + $0xc8] sm:$0xff]   ;;  %v599_v10 = vld [vmem:[%s766_s1 + $0xd0] sm:$0xff]   ;;  %v99_v28 = vunpack.c.0.s8 %v98_v22 }
   0x4   :  { %v592_v3 = vld [vmem:[%s766_s1 + $0x80] sm:$0xff]   ;;  %547 = vmatprep.subr.bf16.mxu1 %v591_v2  ;;  %527 = vmatprep.subr.bf16.mxu0 %v593_v4  ;;  %v596_v7 = vld [vmem:[%s766_s1 + $0x88] sm:$0xff]   ;;  %v600_v11 = vld [vmem:[%s766_s1 + $0x90] sm:$0xff]  }
   0x5   :  { %548 = vmatpush3.bf16.msra.mxu1 %v592_v3  ;;  %v601_v12 = vld [vmem:[%s766_s1 + $0x58] sm:$0xff]   ;;  %v605_v16 = vld [vmem:[%s766_s1 + $0x60] sm:$0xff]   ;;  %v609_v20 = vld [vmem:[%s766_s1 + $0x68] sm:$0xff]   ;;  %v102_v34 = vsub.s32 %v99_v28, %v101_v29 }
   0x6   :  { %549 = vmatprep.subr.bf16.mxu1 %v595_v6  ;;  %v602_v13 = vld [vmem:[%s766_s1 + $0x18] sm:$0xff]   ;;  %v606_v17 = vld [vmem:[%s766_s1 + $0x20] sm:$0xff]   ;;  %v610_v24 = vld [vmem:[%s766_s1 + $0x28] sm:$0xff]  }
   0x7   :  { %528 = vmatpush3.bf16.msra.mxu0 %v594_v5  ;;  %v603_v14 = vld [vmem:[%s766_s1 + $0xd8] sm:$0xff]   ;;  %v607_v18 = vld [vmem:[%s766_s1 + $0xe0] sm:$0xff]   ;;  %v611_v25 = vld [vmem:[%s766_s1 + $0xe8] sm:$0xff]  }
   0x8   :  { %529 = vmatprep.subr.bf16.mxu0 %v597_v8  ;;  %v604_v15 = vld [vmem:[%s766_s1 + $0x98] sm:$0xff]   ;;  %v608_v19 = vld [vmem:[%s766_s1 + $0xa0] sm:$0xff]   ;;  %v612_v26 = vld [vmem:[%s766_s1 + $0xa8] sm:$0xff]  }
   0x9   :  { %550 = vmatpush3.bf16.msra.mxu1 %v596_v7  ;;  %v613_v27 = vld [vmem:[%s766_s1 + $0x70] sm:$0xff]   ;;  %v617_v33 = vld [vmem:[%s766_s1 + $0x78] sm:$0xff]   ;;  %v15_v37 = vld [vmem:[%s767_s0] sm:$0x1f] }
   0xa   :  { %551 = vmatprep.subr.bf16.mxu1 %v599_v10  ;;  %v614_v30 = vld [vmem:[%s766_s1 + $0x30] sm:$0xff]   ;;  %v618_v35 = vld [vmem:[%s766_s1 + $0x38] sm:$0xff]   ;;  %v103_v38 = vrot.slane %v15_v37, %v102_v34  ;;  %v622_v44 = vld [vmem:[%s766_s1 + $0x100] sm:$0xff]   ;;  %v96_v48 = vcombine.high %v15_v37, %v15_v37 }
   0xb   :  { %530 = vmatpush3.bf16.msra.mxu0 %v598_v9  ;;  %v615_v31 = vld [vmem:[%s766_s1 + $0xf0] sm:$0xff]   ;;  %v619_v36 = vld [vmem:[%s766_s1 + $0xf8] sm:$0xff]   ;;  %v623_v47 = vld [vmem:[%s766_s1 + $0x108] sm:$0xff]  }
   0xc   :  { %531 = vmatprep.subr.bf16.mxu0 %v601_v12  ;;  %v616_v32 = vld [vmem:[%s766_s1 + $0xb0] sm:$0xff]   ;;  %v621_v39 = vld [vmem:[%s766_s1 + $0xb8] sm:$0xff]   ;;  %v111_v41 = vcombine.high %v103_v38, %v103_v38  ;;  %v118_v42 = vrot.slane %v103_v38, %v102_v34  ;;  %v110_v50 = vrot.slane %v96_v48, %v102_v34  ;;  %v487_v54 = vld [vmem:[%s768_s2] ss:$0 sm:$0xff] }
   0xd   :  { %552 = vmatpush3.bf16.msra.mxu1 %v600_v11  ;;  %v624_v49 = vld [vmem:[%s766_s1 + $0x110] sm:$0xff]   ;;  %v625_v51 = vld [vmem:[%s766_s1 + $0x118] sm:$0xff]  }
   0xe   :  { %553 = vmatprep.subr.bf16.mxu1 %v603_v14  ;;  %v132_v43 = vrot.slane %v111_v41, %v102_v34  ;;  %v133_v45 = vcombine.high %v118_v42, %v118_v42  ;;  %v125_v52 = vrot.slane %v110_v50, %v102_v34 }
   0xf   :  { %532 = vmatpush3.bf16.msra.mxu0 %v602_v13 }
  0x10   :  { %533 = vmatprep.subr.bf16.mxu0 %v605_v16  ;;  %391 = vmatprep.mubr.bf16.mxu0 %v132_v43  ;;  %v134_v46 = vcombine.high %v132_v43, %v132_v43 }
  0x11   :  { %554 = vmatpush3.bf16.msra.mxu1 %v604_v15 }
  0x12   :  { %555 = vmatprep.subr.bf16.mxu1 %v607_v18  ;;  %431 = vmatprep.mubr.bf16.mxu1 %v134_v46 }
  0x13   :  { %534 = vmatpush3.bf16.msra.mxu0 %v606_v17 }
  0x14   :  { %535 = vmatprep.subr.bf16.mxu0 %v609_v20 }
  0x15   :  { %556 = vmatpush3.bf16.msra.mxu1 %v608_v19 }
  0x16   :  { %557 = vmatprep.subr.bf16.mxu1 %v611_v25 }
  0x17   :  { %536 = vmatpush3.bf16.msra.mxu0 %v610_v24 }
  0x18   :  { %537 = vmatprep.subr.bf16.mxu0 %v613_v27 }
  0x19   :  { %558 = vmatpush3.bf16.msra.mxu1 %v612_v26 }
  0x1a   :  { %559 = vmatprep.subr.bf16.mxu1 %v615_v31 }
  0x1b   :  { %538 = vmatpush3.bf16.msra.mxu0 %v614_v30 }
  0x1c   :  { %539 = vmatprep.subr.bf16.mxu0 %v617_v33 }
  0x1d   :  { %560 = vmatpush3.bf16.msra.mxu1 %v616_v32 }
  0x1e   :  { %561 = vmatprep.subr.bf16.mxu1 %v619_v36 }
  0x1f   :  { %540 = vmatpush3.bf16.msra.mxu0 %v618_v35 }
  0x20   :  { %574 = vmatprep.subr.bf16.mxu0 %v627_v40 }
  0x21   :  { %562 = vmatpush3.bf16.msra.mxu1 %v621_v39 }
  0x22   :  { %392 = vmatmul.mubr.bf16.vlgmr.msra.gmra.mrb[0].mxu0 %v118_v42 }
  0x23   :  { %575 = vmatpush3.bf16.msra.mxu0 %v622_v44  ;;  %582 = vmatprep.mubr.msk.bf16.mxu0 %vm628_vm0, %v627_v40 }
  0x24   :  { %432 = vmatmul.mubr.bf16.vlgmr.msra.gmra.mrb[0].mxu1 %v133_v45  ;;  %576 = vmatprep.subr.bf16.mxu0 %v627_v40 }
  0x27   :  { %577 = vmatpush3.bf16.msra.mxu0 %v623_v47 }
  0x28   :  { %578 = vmatprep.subr.bf16.mxu0 %v627_v40 }
  0x2b   :  { %579 = vmatpush3.bf16.msra.mxu0 %v624_v49 }
  0x2c   :  { %580 = vmatprep.subr.bf16.mxu0 %v627_v40 }
  0x2f   :  { %581 = vmatpush3.bf16.msra.mxu0 %v625_v51 }
  0x32   :  { %583 = vmatmul.mubr.msk.bf16.vlgmr.msra.gmra.mrb[4].mxu0 %vm355_vm1, %v125_v52 }
  0xf5   :  { %v541_v53 = vpop.f32.mrb[0].mxu0 }
  0xf6   :  { %v542_v55 = vpop.f32.mrb[1].mxu0 }
  0xf7   :  { %v543_v56 = vadd.f32 %v542_v55, %v541_v53  ;;  %v544_v57 = vpop.f32.mrb[2].mxu0  ;;  %v563_v58 = vpop.f32.mrb[0].mxu1 }
  0xf8   :  { %v545_v59 = vpop.f32.mrb[3].mxu0  ;;  %v564_v60 = vpop.f32.mrb[1].mxu1 }
  0xf9   :  { %v394_v61 = vadd.f32 %v543_v56, %v487_v54  ;;  %v565_v62 = vadd.f32 %v564_v60, %v563_v58  ;;  %v566_v63 = vpop.f32.mrb[2].mxu1 }
  0xfa   :  { %v567_v0 = vpop.f32.mrb[3].mxu1 }
  0xfb   :  { %v434_v1 = vadd.f32 %v565_v62, %v394_v61 }
 0x105   :  { %v473_v2 = vpop.f32.mrb[4].mxu0 }
 0x106   :  { %v474_v3 = vadd.f32 %v473_v2, %v434_v1  ;;  %v584_v4 = vpop.f32.mrb[5].mxu0 }
 0x107   :  { %v476_v5 = vpop.f32.mrb[6].mxu0 }
 0x108   :  { %v479_v6 = vmax.f32 %v474_v3, 0.0  ;;  %v585_v7 = vpop.f32.mrb[7].mxu0 }
 0x10a   :  { %v480_v8 = vpack.c.bf16 %v479_v6, %v479_v6 }
 0x10c   :  { %482 = vst.msk [vmem:[%s769_s3] sm:$0x1] %vm481_vm2, %v480_v8 }

// kernel: dueling_dqn_forward.7
= control target key start
LH: loop header
LB: loop body
LE: loop exit
PB: predicated region body
PF: predicated region fallthrough
CT: control target
= control target key end

     0   :  { %v1378_v3 = vmov 0   ;;  %vm256_vm0 = vcmask 523264   ;;  %s1737_s1 = inlined_call_operand.vmem [shape: bf16[64,1024], index: 1, kind: input, shape index: {}]   ;;  %s1738_s3 = inlined_call_operand.vmem [shape: bf16[1024,128], index: 3, kind: input, shape index: {}]   ;;  %s1739_s0 = inlined_call_operand.vmem [shape: bf16[2,64], index: 0, kind: input, shape index: {}]   ;;  %s1740_s2 = inlined_call_operand.vmem [shape: f32[1,1024], index: 2, kind: input, shape index: {}]   ;;  %s1741_s4 = inlined_call_operand.vmem [shape: f32[1,128], index: 4, kind: input, shape index: {}]   ;;  %s1742_s5 = inlined_call_operand.vmem [shape: f32[2,128], index: 5, kind: output, shape index: {}]  }
   0x1   :  { %v22_v0 = vld [vmem:[%s1737_s1] sm:$0xff]  ;;  %v23_v2 = vld [vmem:[%s1737_s1 + $0x8] sm:$0xff]  ;;  %292 = vmatprep.mubr.bf16.mxu0 %v1378_v3  ;;  %333 = vmatprep.mubr.bf16.mxu1 %v1378_v3  ;;  %v24_v31 = vld [vmem:[%s1737_s1 + $0x10] sm:$0xff] }
   0x2   :  { %v26_v1 = vld [vmem:[%s1737_s1 + $0x20] sm:$0xff]  ;;  %v27_v5 = vld [vmem:[%s1737_s1 + $0x28] sm:$0xff]  ;;  %v28_v32 = vld [vmem:[%s1737_s1 + $0x30] sm:$0xff] }
   0x3   :  { %v1125_v4 = vcombine.high %v22_v0, %v26_v1  ;;  %v1124_v6 = vcombine.low %v22_v0, %v26_v1  ;;  %v30_v7 = vld [vmem:[%s1737_s1 + $0x40] sm:$0xff]  ;;  %v1127_v9 = vcombine.high %v23_v2, %v27_v5  ;;  %v1126_v10 = vcombine.low %v23_v2, %v27_v5  ;;  %v31_v12 = vld [vmem:[%s1737_s1 + $0x48] sm:$0xff]  ;;  %v25_v33 = vld [vmem:[%s1737_s1 + $0x18] sm:$0xff] }
   0x4   :  { %v34_v8 = vld [vmem:[%s1737_s1 + $0x60] sm:$0xff]  ;;  %v35_v13 = vld [vmem:[%s1737_s1 + $0x68] sm:$0xff]  ;;  %v29_v34 = vld [vmem:[%s1737_s1 + $0x38] sm:$0xff]  ;;  %v1129_v38 = vcombine.high %v24_v31, %v28_v32  ;;  %v1128_v44 = vcombine.low %v24_v31, %v28_v32 }
   0x5   :  { %v1133_v11 = vcombine.high %v30_v7, %v34_v8  ;;  %v38_v14 = vld [vmem:[%s1737_s1 + $0x80] sm:$0xff]  ;;  %260 = vmatprep.subr.bf16.mxu0 %v1125_v4  ;;  %v1135_v15 = vcombine.high %v31_v12, %v35_v13  ;;  %v39_v17 = vld [vmem:[%s1737_s1 + $0x88] sm:$0xff]  ;;  %301 = vmatprep.subr.bf16.mxu1 %v1127_v9  ;;  %v1132_v19 = vcombine.low %v30_v7, %v34_v8  ;;  %v32_v36 = vld [vmem:[%s1737_s1 + $0x50] sm:$0xff] }
   0x6   :  { %v42_v16 = vld [vmem:[%s1737_s1 + $0xa0] sm:$0xff]  ;;  %v43_v18 = vld [vmem:[%s1737_s1 + $0xa8] sm:$0xff]  ;;  %261 = vmatpush1.bf16.msra.mxu0 %v1124_v6  ;;  %302 = vmatpush1.bf16.msra.mxu1 %v1126_v10  ;;  %v1134_v20 = vcombine.low %v31_v12, %v35_v13  ;;  %v36_v39 = vld [vmem:[%s1737_s1 + $0x70] sm:$0xff]  ;;  %v1131_v41 = vcombine.high %v25_v33, %v29_v34  ;;  %v1130_v46 = vcombine.low %v25_v33, %v29_v34 }
   0x7   :  { %262 = vmatprep.subr.bf16.mxu0 %v1133_v11  ;;  %v1141_v21 = vcombine.high %v38_v14, %v42_v16  ;;  %303 = vmatprep.subr.bf16.mxu1 %v1135_v15  ;;  %v1143_v22 = vcombine.high %v39_v17, %v43_v18  ;;  %v46_v23 = vld [vmem:[%s1737_s1 + $0xc0] sm:$0xff]  ;;  %v47_v25 = vld [vmem:[%s1737_s1 + $0xc8] sm:$0xff]  ;;  %v1140_v27 = vcombine.low %v38_v14, %v42_v16  ;;  %v33_v42 = vld [vmem:[%s1737_s1 + $0x58] sm:$0xff] }
   0x8   :  { %v50_v24 = vld [vmem:[%s1737_s1 + $0xe0] sm:$0xff]  ;;  %v51_v26 = vld [vmem:[%s1737_s1 + $0xe8] sm:$0xff]  ;;  %v1142_v28 = vcombine.low %v39_v17, %v43_v18  ;;  %v37_v43 = vld [vmem:[%s1737_s1 + $0x78] sm:$0xff]  ;;  %v1137_v47 = vcombine.high %v32_v36, %v36_v39  ;;  %v1136_v52 = vcombine.low %v32_v36, %v36_v39  ;;  %v56_v36 = vlaneseq }
   0x9   :  { %v1149_v29 = vcombine.high %v46_v23, %v50_v24  ;;  %v1151_v30 = vcombine.high %v47_v25, %v51_v26  ;;  %v1148_v35 = vcombine.low %v46_v23, %v50_v24  ;;  %v1150_v37 = vcombine.low %v47_v25, %v51_v26  ;;  %v21_v40 = vld [vmem:[%s1739_s0] sm:$0x1]  ;;  %v40_v45 = vld [vmem:[%s1737_s1 + $0x90] sm:$0xff]  ;;  %v41_v50 = vld [vmem:[%s1737_s1 + $0x98] sm:$0xff] }
   0xa   :  { %263 = vmatpush1.bf16.msra.mxu0 %v1132_v19  ;;  %304 = vmatpush1.bf16.msra.mxu1 %v1134_v20  ;;  %v44_v48 = vld [vmem:[%s1737_s1 + $0xb0] sm:$0xff]  ;;  %v1139_v49 = vcombine.high %v33_v42, %v37_v43  ;;  %v45_v51 = vld [vmem:[%s1737_s1 + $0xb8] sm:$0xff]  ;;  %v1138_v54 = vcombine.low %v33_v42, %v37_v43  ;;  %v1314_v1 = vld [vmem:[%s1738_s3 + $0x40] sm:$0xff]  }
   0xb   :  { %264 = vmatprep.subr.bf16.mxu0 %v1141_v21  ;;  %305 = vmatprep.subr.bf16.mxu1 %v1143_v22  ;;  %v48_v53 = vld [vmem:[%s1737_s1 + $0xd0] sm:$0xff]  ;;  %v1145_v55 = vcombine.high %v40_v45, %v44_v48  ;;  %v1147_v57 = vcombine.high %v41_v50, %v45_v51  ;;  %v49_v58 = vld [vmem:[%s1737_s1 + $0xd8] sm:$0xff]  ;;  %v1144_v60 = vcombine.low %v40_v45, %v44_v48  ;;  %v1316_v4 = vld [vmem:[%s1738_s3] sm:$0xff]  }
   0xc   :  { %v52_v56 = vld [vmem:[%s1737_s1 + $0xf0] sm:$0xff]  ;;  %v53_v59 = vld [vmem:[%s1737_s1 + $0xf8] sm:$0xff]  ;;  %v1146_v61 = vcombine.low %v41_v50, %v45_v51  ;;  %v1317_v5 = vld [vmem:[%s1738_s3 + $0x80] sm:$0xff]  }
   0xd   :  { %v1153_v62 = vcombine.high %v48_v53, %v52_v56  ;;  %v1155_v63 = vcombine.high %v49_v58, %v53_v59  ;;  %v1152_v0 = vcombine.low %v48_v53, %v52_v56  ;;  %v1154_v2 = vcombine.low %v49_v58, %v53_v59  ;;  %v1318_v6 = vld [vmem:[%s1738_s3 + $0x48] sm:$0xff]   ;;  %v1322_v10 = vld [vmem:[%s1738_s3 + $0x50] sm:$0xff]   ;;  %v1326_v14 = vld [vmem:[%s1738_s3 + $0x58] sm:$0xff]  }
   0xe   :  { %265 = vmatpush1.bf16.msra.mxu0 %v1140_v27  ;;  %306 = vmatpush1.bf16.msra.mxu1 %v1142_v28  ;;  %v1319_v7 = vld [vmem:[%s1738_s3 + $0xc8] sm:$0xff]   ;;  %v1323_v11 = vld [vmem:[%s1738_s3 + $0xd0] sm:$0xff]   ;;  %v1327_v15 = vld [vmem:[%s1738_s3 + $0xd8] sm:$0xff]  }
   0xf   :  { %266 = vmatprep.subr.bf16.mxu0 %v1149_v29  ;;  %307 = vmatprep.subr.bf16.mxu1 %v1151_v30  ;;  %v1320_v8 = vld [vmem:[%s1738_s3 + $0x8] sm:$0xff]   ;;  %v1324_v12 = vld [vmem:[%s1738_s3 + $0x10] sm:$0xff]   ;;  %v1328_v16 = vld [vmem:[%s1738_s3 + $0x18] sm:$0xff]  }
  0x10   :  { %v1321_v9 = vld [vmem:[%s1738_s3 + $0x88] sm:$0xff]   ;;  %v1325_v13 = vld [vmem:[%s1738_s3 + $0x90] sm:$0xff]   ;;  %v1329_v17 = vld [vmem:[%s1738_s3 + $0x98] sm:$0xff]  }
  0x11   :  { %v1330_v18 = vld [vmem:[%s1738_s3 + $0x60] sm:$0xff]   ;;  %v1334_v22 = vld [vmem:[%s1738_s3 + $0x68] sm:$0xff]   ;;  %v1338_v26 = vld [vmem:[%s1738_s3 + $0x70] sm:$0xff]  }
  0x12   :  { %267 = vmatpush1.bf16.msra.mxu0 %v1148_v35  ;;  %308 = vmatpush1.bf16.msra.mxu1 %v1150_v37  ;;  %v1331_v19 = vld [vmem:[%s1738_s3 + $0xe0] sm:$0xff]   ;;  %v1335_v23 = vld [vmem:[%s1738_s3 + $0xe8] sm:$0xff]   ;;  %v1339_v27 = vld [vmem:[%s1738_s3 + $0xf0] sm:$0xff]   ;;  %v1618_v37 = vshrl.u32 %v56_v36, 7 }
  0x13   :  { %342 = vmatprep.subr.bf16.mxu0 %v1129_v38  ;;  %383 = vmatprep.subr.bf16.mxu1 %v1131_v41  ;;  %v1332_v20 = vld [vmem:[%s1738_s3 + $0x20] sm:$0xff]   ;;  %v1336_v24 = vld [vmem:[%s1738_s3 + $0x28] sm:$0xff]   ;;  %v1340_v28 = vld [vmem:[%s1738_s3 + $0x30] sm:$0xff]  }
  0x14   :  { %v1333_v21 = vld [vmem:[%s1738_s3 + $0xa0] sm:$0xff]   ;;  %v1337_v25 = vld [vmem:[%s1738_s3 + $0xa8] sm:$0xff]   ;;  %v1341_v29 = vld [vmem:[%s1738_s3 + $0xb0] sm:$0xff]   ;;  %v58_v38 = vsub.s32 0, %v1618_v37  ;;  %v62_v41 = vsub.s32 1, %v1618_v37  ;;  %v70_v42 = vsub.s32 3, %v1618_v37 }
  0x15   :  { %1156 = vmatmul.mubr.msk.bf16.vlgmr.msra.gmra.mrb[0].mxu0 %vm256_vm0, %v21_v40  ;;  %1157 = vmatmul.mubr.msk.bf16.vlgmr.msra.gmra.mrb[0].mxu1 %vm256_vm0, %v21_v40  ;;  %v1342_v30 = vld [vmem:[%s1738_s3 + $0x78] sm:$0xff]   ;;  %v1346_v34 = vld [vmem:[%s1738_s3 + $0x140] sm:$0xff]  }
  0x16   :  { %343 = vmatpush1.bf16.msra.mxu0 %v1128_v44  ;;  %384 = vmatpush1.bf16.msra.mxu1 %v1130_v46  ;;  %v1343_v31 = vld [vmem:[%s1738_s3 + $0xf8] sm:$0xff]   ;;  %v1347_v35 = vld [vmem:[%s1738_s3 + $0x1c0] sm:$0xff]  }
  0x17   :  { %344 = vmatprep.subr.bf16.mxu0 %v1137_v47  ;;  %385 = vmatprep.subr.bf16.mxu1 %v1139_v49  ;;  %v1344_v32 = vld [vmem:[%s1738_s3 + $0x38] sm:$0xff]   ;;  %v1624_v39 = vld [vmem:[%s1740_s2] sm:$0xff] }
  0x18   :  { %374 = vmatprep.mubr.bf16.mxu0 %v1378_v3  ;;  %415 = vmatprep.mubr.bf16.mxu1 %v1378_v3  ;;  %v1315_v3 = vld [vmem:[%s1738_s3 + $0xc0] sm:$0xff]   ;;  %v1345_v33 = vld [vmem:[%s1738_s3 + $0xb8] sm:$0xff]   ;;  %v59_v43 = vrot.slane %v1624_v39, %v58_v38  ;;  %v63_v45 = vrot.slane %v1624_v39, %v62_v41  ;;  %v71_v46 = vrot.slane %v1624_v39, %v70_v42  ;;  %v82_v38 = vsub.s32 6, %v1618_v37  ;;  %v1366_v42 = vld [vmem:[%s1738_s3 + $0x168] sm:$0xff]  }
  0x19   :  { %v74_v41 = vsub.s32 4, %v1618_v37 }
  0x1a   :  { %345 = vmatpush1.bf16.msra.mxu0 %v1136_v52  ;;  %386 = vmatpush1.bf16.msra.mxu1 %v1138_v54 }
  0x1b   :  { %346 = vmatprep.subr.bf16.mxu0 %v1145_v55  ;;  %387 = vmatprep.subr.bf16.mxu1 %v1147_v57 }
  0x1e   :  { %347 = vmatpush1.bf16.msra.mxu0 %v1144_v60  ;;  %388 = vmatpush1.bf16.msra.mxu1 %v1146_v61 }
  0x1f   :  { %348 = vmatprep.subr.bf16.mxu0 %v1153_v62  ;;  %389 = vmatprep.subr.bf16.mxu1 %v1155_v63 }
  0x22   :  { %349 = vmatpush1.bf16.msra.mxu0 %v1152_v0  ;;  %390 = vmatpush1.bf16.msra.mxu1 %v1154_v2 }
  0x23   :  { %1225 = vmatprep.subr.bf16.mxu0 %v1314_v1  ;;  %1247 = vmatprep.subr.bf16.mxu1 %v1315_v3  ;;  %v1348_v1 = vld [vmem:[%s1738_s3 + $0x100] sm:$0xff]  }
  0x25   :  { %1158 = vmatmul.mubr.msk.bf16.vlgmr.msra.gmra.mrb[4].mxu0 %vm256_vm0, %v21_v40  ;;  %1159 = vmatmul.mubr.msk.bf16.vlgmr.msra.gmra.mrb[4].mxu1 %vm256_vm0, %v21_v40  ;;  %v66_v40 = vsub.s32 2, %v1618_v37 }
  0x26   :  { %1226 = vmatpush3.bf16.msra.mxu0 %v1316_v4  ;;  %1248 = vmatpush3.bf16.msra.mxu1 %v1317_v5  ;;  %v1349_v4 = vld [vmem:[%s1738_s3 + $0x180] sm:$0xff]   ;;  %v1350_v5 = vld [vmem:[%s1738_s3 + $0x148] sm:$0xff]  }
  0x27   :  { %1227 = vmatprep.subr.bf16.mxu0 %v1318_v6  ;;  %1249 = vmatprep.subr.bf16.mxu1 %v1319_v7  ;;  %v67_v44 = vrot.slane %v1624_v39, %v66_v40  ;;  %v1351_v6 = vld [vmem:[%s1738_s3 + $0x1c8] sm:$0xff]   ;;  %v1365_v40 = vld [vmem:[%s1738_s3 + $0x1a0] sm:$0xff]  }
  0x28   :  { %v1352_v7 = vld [vmem:[%s1738_s3 + $0x108] sm:$0xff]  }
  0x2a   :  { %1228 = vmatpush3.bf16.msra.mxu0 %v1320_v8  ;;  %1250 = vmatpush3.bf16.msra.mxu1 %v1321_v9  ;;  %v78_v8 = vsub.s32 5, %v1618_v37  ;;  %v1353_v9 = vld [vmem:[%s1738_s3 + $0x188] sm:$0xff]  }
  0x2b   :  { %1229 = vmatprep.subr.bf16.mxu0 %v1322_v10  ;;  %1251 = vmatprep.subr.bf16.mxu1 %v1323_v11  ;;  %v1354_v10 = vld [vmem:[%s1738_s3 + $0x150] sm:$0xff]   ;;  %v86_v11 = vsub.s32 7, %v1618_v37  ;;  %v75_v37 = vrot.slane %v1624_v39, %v74_v41 }
  0x2e   :  { %1230 = vmatpush3.bf16.msra.mxu0 %v1324_v12  ;;  %1252 = vmatpush3.bf16.msra.mxu1 %v1325_v13  ;;  %v1355_v12 = vld [vmem:[%s1738_s3 + $0x1d0] sm:$0xff]  }
  0x2f   :  { %1231 = vmatprep.subr.bf16.mxu0 %v1326_v14  ;;  %1253 = vmatprep.subr.bf16.mxu1 %v1327_v15  ;;  %v1356_v13 = vld [vmem:[%s1738_s3 + $0x110] sm:$0xff]   ;;  %v79_v14 = vrot.slane %v1624_v39, %v78_v8 }
  0x30   :  { %v1357_v15 = vld [vmem:[%s1738_s3 + $0x190] sm:$0xff]  }
  0x32   :  { %1232 = vmatpush3.bf16.msra.mxu0 %v1328_v16  ;;  %1254 = vmatpush3.bf16.msra.mxu1 %v1329_v17  ;;  %v1358_v16 = vld [vmem:[%s1738_s3 + $0x158] sm:$0xff]   ;;  %v87_v17 = vrot.slane %v1624_v39, %v86_v11 }
  0x33   :  { %1233 = vmatprep.subr.bf16.mxu0 %v1330_v18  ;;  %1255 = vmatprep.subr.bf16.mxu1 %v1331_v19  ;;  %v1359_v18 = vld [vmem:[%s1738_s3 + $0x1d8] sm:$0xff]  }
  0x36   :  { %1234 = vmatpush3.bf16.msra.mxu0 %v1332_v20  ;;  %1256 = vmatpush3.bf16.msra.mxu1 %v1333_v21 }
  0x37   :  { %1235 = vmatprep.subr.bf16.mxu0 %v1334_v22  ;;  %1257 = vmatprep.subr.bf16.mxu1 %v1335_v23  ;;  %v1360_v22 = vld [vmem:[%s1738_s3 + $0x118] sm:$0xff]  }
  0x3a   :  { %1236 = vmatpush3.bf16.msra.mxu0 %v1336_v24  ;;  %1258 = vmatpush3.bf16.msra.mxu1 %v1337_v25 }
  0x3b   :  { %1237 = vmatprep.subr.bf16.mxu0 %v1338_v26  ;;  %1259 = vmatprep.subr.bf16.mxu1 %v1339_v27  ;;  %v1361_v26 = vld [vmem:[%s1738_s3 + $0x198] sm:$0xff]   ;;  %v1362_v27 = vld [vmem:[%s1738_s3 + $0x160] sm:$0xff]  }
  0x3e   :  { %1238 = vmatpush3.bf16.msra.mxu0 %v1340_v28  ;;  %1260 = vmatpush3.bf16.msra.mxu1 %v1341_v29 }
  0x3f   :  { %1239 = vmatprep.subr.bf16.mxu0 %v1342_v30  ;;  %1261 = vmatprep.subr.bf16.mxu1 %v1343_v31  ;;  %v1363_v31 = vld [vmem:[%s1738_s3 + $0x1e0] sm:$0xff]  }
  0x42   :  { %1240 = vmatpush3.bf16.msra.mxu0 %v1344_v32  ;;  %1262 = vmatpush3.bf16.msra.mxu1 %v1345_v33 }
  0x43   :  { %1269 = vmatprep.subr.bf16.mxu0 %v1346_v34  ;;  %1291 = vmatprep.subr.bf16.mxu1 %v1347_v35  ;;  %v1364_v35 = vld [vmem:[%s1738_s3 + $0x120] sm:$0xff]  }
  0xe8   :  { %v294_v47 = vpop.f32.mrb[0].mxu0  ;;  %v335_v49 = vpop.f32.mrb[0].mxu1 }
  0xe9   :  { %v295_v48 = vadd.f32 %v294_v47, %v59_v43  ;;  %v296_v50 = vpop.f32.mrb[1].mxu0  ;;  %v336_v51 = vadd.f32 %v335_v49, %v67_v44  ;;  %v337_v53 = vpop.f32.mrb[1].mxu1  ;;  %v1367_v44 = vld [vmem:[%s1738_s3 + $0x1e8] sm:$0xff]   ;;  %v1371_v49 = vld [vmem:[%s1738_s3 + $0x1f0] sm:$0xff]  }
  0xea   :  { %v297_v52 = vadd.f32 %v296_v50, %v63_v45  ;;  %v298_v54 = vpop.f32.mrb[2].mxu0  ;;  %v338_v56 = vadd.f32 %v337_v53, %v71_v46  ;;  %v339_v57 = vpop.f32.mrb[2].mxu1  ;;  %v1368_v45 = vld [vmem:[%s1738_s3 + $0x128] sm:$0xff]   ;;  %v83_v46 = vrot.slane %v1624_v39, %v82_v38  ;;  %v1372_v39 = vld [vmem:[%s1738_s3 + $0x130] sm:$0xff]   ;;  %v1374_v53 = vld [vmem:[%s1738_s3 + $0x178] sm:$0xff]  }
  0xeb   :  { %v424_v55 = vmax.f32 %v295_v48, 0.0  ;;  %v299_v58 = vpop.f32.mrb[3].mxu0  ;;  %v426_v59 = vmax.f32 %v336_v51, 0.0  ;;  %v340_v61 = vpop.f32.mrb[3].mxu1  ;;  %v1369_v47 = vld [vmem:[%s1738_s3 + $0x1a8] sm:$0xff]   ;;  %v1370_v48 = vld [vmem:[%s1738_s3 + $0x170] sm:$0xff]  }
  0xec   :  { %v425_v60 = vmax.f32 %v297_v52, 0.0  ;;  %v427_v62 = vmax.f32 %v338_v56, 0.0  ;;  %v1373_v52 = vld [vmem:[%s1738_s3 + $0x1b0] sm:$0xff]   ;;  %v1375_v54 = vld [vmem:[%s1738_s3 + $0x1f8] sm:$0xff]  }
  0xed   :  { %v434_v63 = vpack.c.bf16 %v426_v59, %v426_v59  ;;  %v432_v2 = vpack.c.bf16 %v424_v55, %v424_v55  ;;  %v1376_v56 = vld [vmem:[%s1738_s3 + $0x138] sm:$0xff]  }
  0xee   :  { %v433_v0 = vpack.c.bf16 %v425_v60, %v425_v60  ;;  %v435_v3 = vpack.c.bf16 %v427_v62, %v427_v62  ;;  %v1377_v58 = vld [vmem:[%s1738_s3 + $0x1b8] sm:$0xff]  }
  0xf0   :  { %991 = vmatprep.mubr.bf16.mxu0 %v433_v0  ;;  %1031 = vmatprep.mubr.bf16.mxu1 %v435_v3 }
  0xf1   :  { %992 = vmatmul.mubr.bf16.vlgmr.msra.gmra.mrb[8].mxu0 %v432_v2  ;;  %1032 = vmatmul.mubr.bf16.vlgmr.msra.gmra.mrb[8].mxu1 %v434_v63  ;;  %v1160_v63 = vld [vmem:[%s1741_s4] ss:$0 sm:$0xff] }
  0xf2   :  { %1270 = vmatpush3.bf16.msra.mxu0 %v1348_v1  ;;  %1292 = vmatpush3.bf16.msra.mxu1 %v1349_v4 }
  0xf3   :  { %1271 = vmatprep.subr.bf16.mxu0 %v1350_v5  ;;  %1293 = vmatprep.subr.bf16.mxu1 %v1351_v6 }
  0xf6   :  { %1272 = vmatpush3.bf16.msra.mxu0 %v1352_v7  ;;  %1294 = vmatpush3.bf16.msra.mxu1 %v1353_v9 }
  0xf7   :  { %1273 = vmatprep.subr.bf16.mxu0 %v1354_v10  ;;  %1295 = vmatprep.subr.bf16.mxu1 %v1355_v12 }
  0xf8   :  { %v376_v19 = vpop.f32.mrb[4].mxu0  ;;  %v417_v21 = vpop.f32.mrb[4].mxu1 }
  0xf9   :  { %v378_v20 = vpop.f32.mrb[5].mxu0  ;;  %v419_v25 = vpop.f32.mrb[5].mxu1  ;;  %v418_v50 = vadd.f32 %v417_v21, %v83_v46  ;;  %v377_v51 = vadd.f32 %v376_v19, %v75_v37 }
  0xfa   :  { %1274 = vmatpush3.bf16.msra.mxu0 %v1356_v13  ;;  %v379_v23 = vadd.f32 %v378_v20, %v79_v14  ;;  %v380_v24 = vpop.f32.mrb[6].mxu0  ;;  %1296 = vmatpush3.bf16.msra.mxu1 %v1357_v15  ;;  %v420_v29 = vadd.f32 %v419_v25, %v87_v17  ;;  %v421_v30 = vpop.f32.mrb[6].mxu1 }
  0xfb   :  { %1275 = vmatprep.subr.bf16.mxu0 %v1358_v16  ;;  %v381_v28 = vpop.f32.mrb[7].mxu0  ;;  %1297 = vmatprep.subr.bf16.mxu1 %v1359_v18  ;;  %v422_v33 = vpop.f32.mrb[7].mxu1  ;;  %v430_v55 = vmax.f32 %v418_v50, 0.0  ;;  %v428_v57 = vmax.f32 %v377_v51, 0.0 }
  0xfc   :  { %v429_v32 = vmax.f32 %v379_v23, 0.0  ;;  %v431_v34 = vmax.f32 %v420_v29, 0.0 }
  0xfd   :  { %v438_v59 = vpack.c.bf16 %v430_v55, %v430_v55  ;;  %v436_v60 = vpack.c.bf16 %v428_v57, %v428_v57 }
  0xfe   :  { %1276 = vmatpush3.bf16.msra.mxu0 %v1360_v22  ;;  %v437_v36 = vpack.c.bf16 %v429_v32, %v429_v32  ;;  %1298 = vmatpush3.bf16.msra.mxu1 %v1361_v26  ;;  %v439_v43 = vpack.c.bf16 %v431_v34, %v431_v34 }
  0xff   :  { %1277 = vmatprep.subr.bf16.mxu0 %v1362_v27  ;;  %1299 = vmatprep.subr.bf16.mxu1 %v1363_v31 }
 0x100   :  { %1071 = vmatprep.mubr.bf16.mxu0 %v437_v36  ;;  %1111 = vmatprep.mubr.bf16.mxu1 %v439_v43 }
 0x102   :  { %1278 = vmatpush3.bf16.msra.mxu0 %v1364_v35  ;;  %1300 = vmatpush3.bf16.msra.mxu1 %v1365_v40 }
 0x103   :  { %1279 = vmatprep.subr.bf16.mxu0 %v1366_v42  ;;  %1301 = vmatprep.subr.bf16.mxu1 %v1367_v44 }
 0x106   :  { %1280 = vmatpush3.bf16.msra.mxu0 %v1368_v45  ;;  %1302 = vmatpush3.bf16.msra.mxu1 %v1369_v47 }
 0x107   :  { %1281 = vmatprep.subr.bf16.mxu0 %v1370_v48  ;;  %1303 = vmatprep.subr.bf16.mxu1 %v1371_v49 }
 0x10a   :  { %1282 = vmatpush3.bf16.msra.mxu0 %v1372_v39  ;;  %1304 = vmatpush3.bf16.msra.mxu1 %v1373_v52 }
 0x10b   :  { %1283 = vmatprep.subr.bf16.mxu0 %v1374_v53  ;;  %1305 = vmatprep.subr.bf16.mxu1 %v1375_v54 }
 0x10e   :  { %1284 = vmatpush3.bf16.msra.mxu0 %v1376_v56  ;;  %1306 = vmatpush3.bf16.msra.mxu1 %v1377_v58 }
 0x111   :  { %1072 = vmatmul.mubr.bf16.vlgmr.msra.gmra.mrb[12].mxu0 %v436_v60  ;;  %1112 = vmatmul.mubr.bf16.vlgmr.msra.gmra.mrb[12].mxu1 %v438_v59 }
 0x1c4   :  { %v1241_v61 = vpop.f32.mrb[8].mxu0  ;;  %v1263_v62 = vpop.f32.mrb[8].mxu1 }
 0x1c5   :  { %v1242_v0 = vpop.f32.mrb[9].mxu0  ;;  %v1264_v2 = vpop.f32.mrb[9].mxu1 }
 0x1c6   :  { %v1243_v1 = vadd.f32 %v1242_v0, %v1241_v61  ;;  %v1244_v3 = vpop.f32.mrb[10].mxu0  ;;  %v1265_v4 = vadd.f32 %v1264_v2, %v1263_v62  ;;  %v1266_v5 = vpop.f32.mrb[10].mxu1 }
 0x1c7   :  { %v1245_v6 = vpop.f32.mrb[11].mxu0  ;;  %v1267_v8 = vpop.f32.mrb[11].mxu1 }
 0x1c8   :  { %v994_v7 = vadd.f32 %v1243_v1, %v1160_v63 }
 0x1ca   :  { %v1034_v9 = vadd.f32 %v1265_v4, %v994_v7 }
 0x1e4   :  { %v1285_v10 = vpop.f32.mrb[12].mxu0  ;;  %v1307_v11 = vpop.f32.mrb[12].mxu1 }
 0x1e5   :  { %v1286_v12 = vpop.f32.mrb[13].mxu0  ;;  %v1308_v14 = vpop.f32.mrb[13].mxu1 }
 0x1e6   :  { %v1287_v13 = vadd.f32 %v1286_v12, %v1285_v10  ;;  %v1288_v15 = vpop.f32.mrb[14].mxu0  ;;  %v1309_v16 = vadd.f32 %v1308_v14, %v1307_v11  ;;  %v1310_v17 = vpop.f32.mrb[14].mxu1 }
 0x1e7   :  { %v1289_v18 = vpop.f32.mrb[15].mxu0  ;;  %v1311_v20 = vpop.f32.mrb[15].mxu1 }
 0x1e8   :  { %v1074_v19 = vadd.f32 %v1287_v13, %v1034_v9 }
 0x1ea   :  { %v1114_v21 = vadd.f32 %v1309_v16, %v1074_v19 }
 0x1ec   :  { %1119 = vst [vmem:[%s1742_s5] sm:$0x3] %v1114_v21 }

</bundles_post_ra>
